<compile_context>
chip_gen: v7x
topology: tpu7x:2x2x1
jax: 0.10.0
libtpu: 0.0.40
codegen_flags: <defaults>
</compile_context>

<pallas_src>
import functools
import math

import jax
import jax.numpy as jnp
from jax.experimental import pallas as pl
from jax.experimental.pallas import tpu as pltpu

_LANE = 128                       # TPU lane width
_NEG_INF = -1e30                  # finite mask for padded class columns (f32)
_VMEM_LIMIT = 32 * 1024 * 1024    # explicit scoped-VMEM limit (safe on v5e/v6e/v7x)


def _round_up(x, m):
    return (x + m - 1) // m * m


def _choose_row_tile(n, tm):
    """Keep tm a multiple of 128; shrink so there are >=2 row tiles (megacore)."""
    tm = max(_LANE, (tm // _LANE) * _LANE)
    while tm > _LANE and (n + tm - 1) // tm < 2:
        tm = max(_LANE, (tm // 2) // _LANE * _LANE)
    return tm


# ---------------------------------------------------------------------------
# Kernel: s = x @ W     (row-tiled; W fully VMEM-resident, computed once)
# ---------------------------------------------------------------------------
def _support_kernel(x_ref, w_ref, o_ref):
    o_ref[...] = jnp.dot(
        x_ref[...], w_ref[...], preferred_element_type=jnp.float32
    ).astype(o_ref.dtype)


# ---------------------------------------------------------------------------
# RESIDENT mode kernels (support fully VMEM-resident, no k axis, no accumulator)
# ---------------------------------------------------------------------------
def _layer1_resident_kernel(adj_ref, s1_ref, b1_ref, w2_ref, s2_ref):
    # h = relu(adj_rowblock @ s1 + b1); fused: s2 = h @ W2   (dropout = identity)
    h = jnp.dot(adj_ref[...], s1_ref[...], preferred_element_type=jnp.float32)
    h = jnp.maximum(h + b1_ref[...], 0.0).astype(jnp.bfloat16)
    s2_ref[...] = jnp.dot(
        h, w2_ref[...], preferred_element_type=jnp.float32
    ).astype(s2_ref.dtype)


def _layer2_resident_kernel(adj_ref, s2_ref, b2_ref, o_ref, *, nclass):
    z = jnp.dot(adj_ref[...], s2_ref[...], preferred_element_type=jnp.float32)
    z = z + b2_ref[...]
    col = jax.lax.broadcasted_iota(jnp.int32, z.shape, 1)
    z = jnp.where(col < nclass, z, _NEG_INF)
    m = jnp.max(z, axis=-1, keepdims=True)
    shifted = z - m
    lse = jnp.log(jnp.sum(jnp.exp(shifted), axis=-1, keepdims=True))
    o_ref[...] = (shifted - lse).astype(o_ref.dtype)


# ---------------------------------------------------------------------------
# K-TILED fallback kernels (large graphs): grid = (row tiles i, neighbor tiles k)
# ---------------------------------------------------------------------------
def _layer1_ktiled_kernel(adj_ref, s1_ref, b1_ref, w2_ref, s2_ref, acc_ref):
    k = pl.program_id(1)
    prod = jnp.dot(adj_ref[...], s1_ref[...], preferred_element_type=jnp.float32)

    @pl.when(k == 0)
    def _():
        acc_ref[...] = prod          # assign (no zero-init store+load round trip)

    @pl.when(k > 0)
    def _():
        acc_ref[...] += prod

    @pl.when(k == pl.num_programs(1) - 1)
    def _():
        h = jnp.maximum(acc_ref[...] + b1_ref[...], 0.0).astype(jnp.bfloat16)
        s2_ref[...] = jnp.dot(
            h, w2_ref[...], preferred_element_type=jnp.float32
        ).astype(s2_ref.dtype)


def _layer2_ktiled_kernel(adj_ref, s2_ref, b2_ref, o_ref, acc_ref, *, nclass):
    k = pl.program_id(1)
    prod = jnp.dot(adj_ref[...], s2_ref[...], preferred_element_type=jnp.float32)

    @pl.when(k == 0)
    def _():
        acc_ref[...] = prod

    @pl.when(k > 0)
    def _():
        acc_ref[...] += prod

    @pl.when(k == pl.num_programs(1) - 1)
    def _():
        z = acc_ref[...] + b2_ref[...]
        col = jax.lax.broadcasted_iota(jnp.int32, z.shape, 1)
        z = jnp.where(col < nclass, z, _NEG_INF)
        m = jnp.max(z, axis=-1, keepdims=True)
        shifted = z - m
        lse = jnp.log(jnp.sum(jnp.exp(shifted), axis=-1, keepdims=True))
        o_ref[...] = (shifted - lse).astype(o_ref.dtype)


# ---------------------------------------------------------------------------
# pallas_call wrappers
# ---------------------------------------------------------------------------
def _support_call(x, w, *, tm):
    n_pad, f = x.shape
    hp = w.shape[1]
    return pl.pallas_call(
        _support_kernel,
        out_shape=jax.ShapeDtypeStruct((n_pad, hp), jnp.bfloat16),
        grid_spec=pltpu.PrefetchScalarGridSpec(
            num_scalar_prefetch=0,
            grid=(n_pad // tm,),
            in_specs=[
                pl.BlockSpec((tm, f), lambda i: (i, 0)),
                pl.BlockSpec((f, hp), lambda i: (0, 0)),
            ],
            out_specs=pl.BlockSpec((tm, hp), lambda i: (i, 0)),
        ),
        compiler_params=pltpu.CompilerParams(
            dimension_semantics=("parallel",),
            vmem_limit_bytes=_VMEM_LIMIT),
        cost_estimate=pl.CostEstimate(
            flops=2 * n_pad * f * hp,
            transcendentals=0,
            bytes_accessed=n_pad * f * 2 + f * hp * 2 + n_pad * hp * 2),
    )(x, w)


def _layer1_resident_call(adj, s1, b1, w2, *, tm):
    n_pad = adj.shape[0]
    hp = s1.shape[1]
    cp = w2.shape[1]
    return pl.pallas_call(
        _layer1_resident_kernel,
        out_shape=jax.ShapeDtypeStruct((n_pad, cp), jnp.bfloat16),
        grid_spec=pltpu.PrefetchScalarGridSpec(
            num_scalar_prefetch=0,
            grid=(n_pad // tm,),
            in_specs=[
                pl.BlockSpec((tm, n_pad), lambda i: (i, 0)),   # streamed adj row block
                pl.BlockSpec((n_pad, hp), lambda i: (0, 0)),   # resident support s1
                pl.BlockSpec((1, hp), lambda i: (0, 0)),       # bias 1
                pl.BlockSpec((hp, cp), lambda i: (0, 0)),      # W2 (fused)
            ],
            out_specs=pl.BlockSpec((tm, cp), lambda i: (i, 0)),
        ),
        compiler_params=pltpu.CompilerParams(
            dimension_semantics=("parallel",),
            vmem_limit_bytes=_VMEM_LIMIT),
        cost_estimate=pl.CostEstimate(
            flops=2 * n_pad * n_pad * hp + 2 * n_pad * hp * cp,
            transcendentals=0,
            bytes_accessed=(n_pad * n_pad * 2 + n_pad * hp * 2
                            + hp * cp * 2 + n_pad * cp * 2)),
    )(adj, s1, b1, w2)


def _layer2_resident_call(adj, s2, b2, *, nclass, tm):
    n_pad = adj.shape[0]
    cp = s2.shape[1]
    kern = functools.partial(_layer2_resident_kernel, nclass=nclass)
    return pl.pallas_call(
        kern,
        out_shape=jax.ShapeDtypeStruct((n_pad, cp), jnp.float32),
        grid_spec=pltpu.PrefetchScalarGridSpec(
            num_scalar_prefetch=0,
            grid=(n_pad // tm,),
            in_specs=[
                pl.BlockSpec((tm, n_pad), lambda i: (i, 0)),
                pl.BlockSpec((n_pad, cp), lambda i: (0, 0)),
                pl.BlockSpec((1, cp), lambda i: (0, 0)),
            ],
            out_specs=pl.BlockSpec((tm, cp), lambda i: (i, 0)),
        ),
        compiler_params=pltpu.CompilerParams(
            dimension_semantics=("parallel",),
            vmem_limit_bytes=_VMEM_LIMIT),
        cost_estimate=pl.CostEstimate(
            flops=2 * n_pad * n_pad * cp,
            transcendentals=n_pad * cp,
            bytes_accessed=(n_pad * n_pad * 2 + n_pad * cp * 2 + n_pad * cp * 4)),
    )(adj, s2, b2)


def _layer1_ktiled_call(adj, s1, b1, w2, *, tm, tk):
    n_pad = adj.shape[0]
    hp = s1.shape[1]
    cp = w2.shape[1]
    return pl.pallas_call(
        _layer1_ktiled_kernel,
        out_shape=jax.ShapeDtypeStruct((n_pad, cp), jnp.bfloat16),
        grid_spec=pltpu.PrefetchScalarGridSpec(
            num_scalar_prefetch=0,
            grid=(n_pad // tm, n_pad // tk),
            in_specs=[
                pl.BlockSpec((tm, tk), lambda i, k: (i, k)),
                pl.BlockSpec((tk, hp), lambda i, k: (k, 0)),
                pl.BlockSpec((1, hp), lambda i, k: (0, 0)),
                pl.BlockSpec((hp, cp), lambda i, k: (0, 0)),
            ],
            out_specs=pl.BlockSpec((tm, cp), lambda i, k: (i, 0)),
            scratch_shapes=[pltpu.VMEM((tm, hp), jnp.float32)],
        ),
        compiler_params=pltpu.CompilerParams(
            dimension_semantics=("parallel", "arbitrary"),
            vmem_limit_bytes=_VMEM_LIMIT),
        cost_estimate=pl.CostEstimate(
            flops=2 * n_pad * n_pad * hp + 2 * n_pad * hp * cp,
            transcendentals=0,
            bytes_accessed=(n_pad * n_pad * 2
                            + (n_pad // tm) * n_pad * hp * 2   # support re-streamed
                            + hp * cp * 2 + n_pad * cp * 2)),
    )(adj, s1, b1, w2)


def _layer2_ktiled_call(adj, s2, b2, *, nclass, tm, tk):
    n_pad = adj.shape[0]
    cp = s2.shape[1]
    kern = functools.partial(_layer2_ktiled_kernel, nclass=nclass)
    return pl.pallas_call(
        kern,
        out_shape=jax.ShapeDtypeStruct((n_pad, cp), jnp.float32),
        grid_spec=pltpu.PrefetchScalarGridSpec(
            num_scalar_prefetch=0,
            grid=(n_pad // tm, n_pad // tk),
            in_specs=[
                pl.BlockSpec((tm, tk), lambda i, k: (i, k)),
                pl.BlockSpec((tk, cp), lambda i, k: (k, 0)),
                pl.BlockSpec((1, cp), lambda i, k: (0, 0)),
            ],
            out_specs=pl.BlockSpec((tm, cp), lambda i, k: (i, 0)),
            scratch_shapes=[pltpu.VMEM((tm, cp), jnp.float32)],
        ),
        compiler_params=pltpu.CompilerParams(
            dimension_semantics=("parallel", "arbitrary"),
            vmem_limit_bytes=_VMEM_LIMIT),
        cost_estimate=pl.CostEstimate(
            flops=2 * n_pad * n_pad * cp,
            transcendentals=n_pad * cp,
            bytes_accessed=(n_pad * n_pad * 2
                            + (n_pad // tm) * n_pad * cp * 2
                            + n_pad * cp * 4)),
    )(adj, s2, b2)


# ---------------------------------------------------------------------------
# Forward pass
# ---------------------------------------------------------------------------
def gcn_forward(x, adj, w1, b1, w2, b2, *, tm=256, tk=512,
                vmem_budget_bytes=20 * 1024 * 1024):
    n, nfeat = x.shape
    nhid = w1.shape[1]
    nclass = w2.shape[1]

    hp = _round_up(nhid, _LANE)
    cp = _round_up(nclass, _LANE)
    fp = _round_up(nfeat, _LANE)          # lane-dense x stream / W1 contraction dim

    # ---- mode / tile selection ----
    tm_r = _choose_row_tile(n, tm)
    n_pad_r = _round_up(n, tm_r)
    lane_max = max(hp, cp)
    # resident working-set estimate: double-buffered adj row block + resident
    # support (worst layer) + output block + W2 + f32 epilogue slack.
    resident_bytes = (2 * tm_r * n_pad_r * 2
                      + 2 * n_pad_r * lane_max * 2
                      + 2 * tm_r * lane_max * 2
                      + hp * cp * 2
                      + tm_r * lane_max * 4)
    use_resident = resident_bytes <= vmem_budget_bytes

    if use_resident:
        tm_use = tm_r
        tk_use = None
        n_pad = n_pad_r
    else:
        tm_use = max(_LANE, (tm // _LANE) * _LANE)
        tk_use = max(_LANE, (tk // _LANE) * _LANE)
        n_pad = _round_up(n, (tm_use * tk_use) // math.gcd(tm_use, tk_use))

    # ---- pad & cast (streamed operands bf16, f32 accumulation in-kernel) ----
    x_p = jnp.zeros((n_pad, fp), jnp.bfloat16).at[:n, :nfeat].set(x.astype(jnp.bfloat16))
    adj_p = jnp.zeros((n_pad, n_pad), jnp.bfloat16).at[:n, :n].set(adj.astype(jnp.bfloat16))
    w1_p = jnp.zeros((fp, hp), jnp.bfloat16).at[:nfeat, :nhid].set(w1.astype(jnp.bfloat16))
    b1_p = jnp.zeros((1, hp), jnp.float32).at[:, :nhid].set(
        b1.astype(jnp.float32).reshape(1, -1))
    w2_p = jnp.zeros((hp, cp), jnp.bfloat16).at[:nhid, :nclass].set(w2.astype(jnp.bfloat16))
    b2_p = jnp.zeros((1, cp), jnp.float32).at[:, :nclass].set(
        b2.astype(jnp.float32).reshape(1, -1))

    # ---- s1 = x @ W1, computed once ----
    s1 = _support_call(x_p, w1_p, tm=tm_use)                           # (Np, Hp) bf16

    # ---- fused: s2 = relu(adj @ s1 + b1) @ W2 ----
    # Dropout: F.dropout(h, p, training=False) is identity at inference.
    # TODO(synk): training-mode dropout via pltpu.prng_seed + pltpu.prng_random_bits.
    if use_resident:
        s2 = _layer1_resident_call(adj_p, s1, b1_p, w2_p, tm=tm_use)   # (Np, Cp) bf16
        out = _layer2_resident_call(adj_p, s2, b2_p, nclass=nclass, tm=tm_use)
    else:
        s2 = _layer1_ktiled_call(adj_p, s1, b1_p, w2_p, tm=tm_use, tk=tk_use)
        out = _layer2_ktiled_call(adj_p, s2, b2_p, nclass=nclass, tm=tm_use, tk=tk_use)

    return out[:n, :nclass]


def init_params(key, nfeat, nhid, nclass):
    # pygcn GraphConvolution init: uniform(-stdv, stdv), stdv = 1/sqrt(out_features)
    k1, k2, k3, k4 = jax.random.split(key, 4)
    s1 = 1.0 / jnp.sqrt(nhid)
    s2 = 1.0 / jnp.sqrt(nclass)
    w1 = jax.random.uniform(k1, (nfeat, nhid), jnp.float32, -s1, s1)
    b1 = jax.random.uniform(k2, (1, nhid), jnp.float32, -s1, s1)
    w2 = jax.random.uniform(k3, (nhid, nclass), jnp.float32, -s2, s2)
    b2 = jax.random.uniform(k4, (1, nclass), jnp.float32, -s2, s2)
    return w1, b1, w2, b2


if __name__ == "__main__":
    key = jax.random.PRNGKey(0)
    N, NFEAT, NHID, NCLASS = 256, 64, 32, 16

    kx, ka, kp = jax.random.split(key, 3)
    x = jax.random.normal(kx, (N, NFEAT), jnp.float32)

    # Symmetric row-normalized dense adjacency with self-loops (as pygcn uses).
    a = (jax.random.uniform(ka, (N, N)) < 0.05).astype(jnp.float32)
    a = jnp.maximum(a, a.T) + jnp.eye(N, dtype=jnp.float32)
    adj = a / jnp.sum(a, axis=1, keepdims=True)

    w1, b1, w2, b2 = init_params(kp, NFEAT, NHID, NCLASS)

    # reference with the same bf16 operand precision / f32 accumulation
    def ref(x, adj, w1, b1, w2, b2):
        xb, ab = x.astype(jnp.bfloat16), adj.astype(jnp.bfloat16)
        w1b, w2b = w1.astype(jnp.bfloat16), w2.astype(jnp.bfloat16)
        s1 = jnp.dot(xb, w1b, preferred_element_type=jnp.float32).astype(jnp.bfloat16)
        h = jnp.dot(ab, s1, preferred_element_type=jnp.float32) + b1
        h = jnp.maximum(h, 0.0).astype(jnp.bfloat16)
        s2 = jnp.dot(h, w2b, preferred_element_type=jnp.float32).astype(jnp.bfloat16)
        z = jnp.dot(ab, s2, preferred_element_type=jnp.float32) + b2
        return jax.nn.log_softmax(z, axis=1)

    expected = ref(x, adj, w1, b1, w2, b2)

    # Primary (resident-support) path.
    out = jax.jit(gcn_forward)(x, adj, w1, b1, w2, b2)
    jax.block_until_ready(out)
    assert out.shape == (N, NCLASS)
    row_prob_sum = jnp.sum(jnp.exp(out), axis=1)
    assert jnp.allclose(row_prob_sum, 1.0, atol=1e-4)
    assert jnp.allclose(out, expected, atol=5e-2, rtol=5e-2)

    # Large-graph fallback (k-tiled accumulation) exercised on the same data.
    ktiled = jax.jit(functools.partial(gcn_forward, tm=128, tk=128,
                                       vmem_budget_bytes=0))
    out_k = ktiled(x, adj, w1, b1, w2, b2)
    jax.block_until_ready(out_k)
    assert out_k.shape == (N, NCLASS)
    assert jnp.allclose(out_k, expected, atol=5e-2, rtol=5e-2)

    print("KERNEL_OK")
</pallas_src>

<mosaic_0001>
module attributes {stable_mosaic.version = 11 : i64} {
  func.func @_support_kernel(%arg0: i32, %arg1: memref<128x128xbf16, #tpu.memory_space<vmem>>, %arg2: memref<128x128xbf16, #tpu.memory_space<vmem>>, %arg3: memref<128x128xbf16, #tpu.memory_space<vmem>>) attributes {dimension_semantics = [#tpu.dimension_semantics<parallel>], iteration_bounds = array<i64: 2>, scalar_prefetch = 0 : i64, scratch_operands = 0 : i64, tpu.core_type = #tpu.core_type<tc>, window_params = [{transform_indices = @transform_0, window_bounds = array<i64: 128, 128>}, {pipeline_mode = #tpu.pipeline_mode<synchronous>, transform_indices = @transform_1, window_bounds = array<i64: 128, 128>}, {transform_indices = @transform_2, window_bounds = array<i64: 128, 128>}]} {
    %c0 = arith.constant 0 : index
    %c0_0 = arith.constant 0 : index
    %0 = vector.load %arg1[%c0, %c0_0] : memref<128x128xbf16, #tpu.memory_space<vmem>>, vector<128x128xbf16>
    %c0_1 = arith.constant 0 : index
    %c0_2 = arith.constant 0 : index
    %1 = vector.load %arg2[%c0_1, %c0_2] : memref<128x128xbf16, #tpu.memory_space<vmem>>, vector<128x128xbf16>
    %cst = arith.constant dense<0.000000e+00> : vector<128x128xf32>
    %2 = tpu.matmul %0, %1, %cst {dimension_numbers = #tpu.dot_dimension_numbers<[1], [0], [0], [1], [0, 0, 1, 1], [], []>} : vector<128x128xbf16>, vector<128x128xbf16>, vector<128x128xf32> -> vector<128x128xf32>
    %3 = arith.truncf %2 : vector<128x128xf32> to vector<128x128xbf16>
    %c0_3 = arith.constant 0 : index
    %c0_4 = arith.constant 0 : index
    %4 = vector.load %arg3[%c0_3, %c0_4] : memref<128x128xbf16, #tpu.memory_space<vmem>>, vector<128x128xbf16>
    tpu.vector_store %arg3[%c0_3, %c0_4], %3 {strides = array<i32>} : memref<128x128xbf16, #tpu.memory_space<vmem>>, vector<128x128xbf16>,
    return
  }
  func.func @transform_0(%arg0: i32) -> (i32, i32) {
    %c0_i32 = arith.constant 0 : i32
    %c0_i32_0 = arith.constant 0 : i32
    return %arg0, %c0_i32 : i32, i32
  }
  func.func @transform_1(%arg0: i32) -> (i32, i32) {
    %c0_i32 = arith.constant 0 : i32
    %c0_i32_0 = arith.constant 0 : i32
    %c0_i32_1 = arith.constant 0 : i32
    return %c0_i32, %c0_i32_0 : i32, i32
  }
  func.func @transform_2(%arg0: i32) -> (i32, i32) {
    %c0_i32 = arith.constant 0 : i32
    %c0_i32_0 = arith.constant 0 : i32
    return %arg0, %c0_i32 : i32, i32
  }
}

module attributes {stable_mosaic.version = 11 : i64} {
  func.func @_layer1_resident_kernel(%arg0: i32, %arg1: memref<128x256xbf16, #tpu.memory_space<vmem>>, %arg2: memref<256x128xbf16, #tpu.memory_space<vmem>>, %arg3: memref<1x128xf32, #tpu.memory_space<vmem>>, %arg4: memref<128x128xbf16, #tpu.memory_space<vmem>>, %arg5: memref<128x128xbf16, #tpu.memory_space<vmem>>) attributes {dimension_semantics = [#tpu.dimension_semantics<parallel>], iteration_bounds = array<i64: 2>, scalar_prefetch = 0 : i64, scratch_operands = 0 : i64, tpu.core_type = #tpu.core_type<tc>, window_params = [{transform_indices = @transform_0, window_bounds = array<i64: 128, 256>}, {pipeline_mode = #tpu.pipeline_mode<synchronous>, transform_indices = @transform_1, window_bounds = array<i64: 256, 128>}, {pipeline_mode = #tpu.pipeline_mode<synchronous>, transform_indices = @transform_2, window_bounds = array<i64: 1, 128>}, {pipeline_mode = #tpu.pipeline_mode<synchronous>, transform_indices = @transform_3, window_bounds = array<i64: 128, 128>}, {transform_indices = @transform_4, window_bounds = array<i64: 128, 128>}]} {
    %c0 = arith.constant 0 : index
    %c0_0 = arith.constant 0 : index
    %0 = vector.load %arg1[%c0, %c0_0] : memref<128x256xbf16, #tpu.memory_space<vmem>>, vector<128x256xbf16>
    %c0_1 = arith.constant 0 : index
    %c0_2 = arith.constant 0 : index
    %1 = vector.load %arg2[%c0_1, %c0_2] : memref<256x128xbf16, #tpu.memory_space<vmem>>, vector<256x128xbf16>
    %cst = arith.constant dense<0.000000e+00> : vector<128x128xf32>
    %2 = tpu.matmul %0, %1, %cst {dimension_numbers = #tpu.dot_dimension_numbers<[1], [0], [0], [1], [0, 0, 1, 1], [], []>} : vector<128x256xbf16>, vector<256x128xbf16>, vector<128x128xf32> -> vector<128x128xf32>
    %c0_3 = arith.constant 0 : index
    %c0_4 = arith.constant 0 : index
    %3 = vector.load %arg3[%c0_3, %c0_4] : memref<1x128xf32, #tpu.memory_space<vmem>>, vector<1x128xf32>
    %4 = vector.broadcast %3 : vector<1x128xf32> to vector<128x128xf32>
    %5 = arith.addf %2, %4 : vector<128x128xf32>
    %cst_5 = arith.constant 0.000000e+00 : f32
    %6 = vector.broadcast %cst_5 : f32 to vector<128x128xf32>
    %7 = arith.maximumf %5, %6 : vector<128x128xf32>
    %8 = arith.truncf %7 : vector<128x128xf32> to vector<128x128xbf16>
    %c0_6 = arith.constant 0 : index
    %c0_7 = arith.constant 0 : index
    %9 = vector.load %arg4[%c0_6, %c0_7] : memref<128x128xbf16, #tpu.memory_space<vmem>>, vector<128x128xbf16>
    %cst_8 = arith.constant dense<0.000000e+00> : vector<128x128xf32>
    %10 = tpu.matmul %8, %9, %cst_8 {dimension_numbers = #tpu.dot_dimension_numbers<[1], [0], [0], [1], [0, 0, 1, 1], [], []>} : vector<128x128xbf16>, vector<128x128xbf16>, vector<128x128xf32> -> vector<128x128xf32>
    %11 = arith.truncf %10 : vector<128x128xf32> to vector<128x128xbf16>
    %c0_9 = arith.constant 0 : index
    %c0_10 = arith.constant 0 : index
    %12 = vector.load %arg5[%c0_9, %c0_10] : memref<128x128xbf16, #tpu.memory_space<vmem>>, vector<128x128xbf16>
    tpu.vector_store %arg5[%c0_9, %c0_10], %11 {strides = array<i32>} : memref<128x128xbf16, #tpu.memory_space<vmem>>, vector<128x128xbf16>,
    return
  }
  func.func @transform_0(%arg0: i32) -> (i32, i32) {
    %c0_i32 = arith.constant 0 : i32
    %c0_i32_0 = arith.constant 0 : i32
    return %arg0, %c0_i32 : i32, i32
  }
  func.func @transform_1(%arg0: i32) -> (i32, i32) {
    %c0_i32 = arith.constant 0 : i32
    %c0_i32_0 = arith.constant 0 : i32
    %c0_i32_1 = arith.constant 0 : i32
    return %c0_i32, %c0_i32_0 : i32, i32
  }
  func.func @transform_2(%arg0: i32) -> (i32, i32) {
    %c0_i32 = arith.constant 0 : i32
    %c0_i32_0 = arith.constant 0 : i32
    %c0_i32_1 = arith.constant 0 : i32
    return %c0_i32, %c0_i32_0 : i32, i32
  }
  func.func @transform_3(%arg0: i32) -> (i32, i32) {
    %c0_i32 = arith.constant 0 : i32
    %c0_i32_0 = arith.constant 0 : i32
    %c0_i32_1 = arith.constant 0 : i32
    return %c0_i32, %c0_i32_0 : i32, i32
  }
  func.func @transform_4(%arg0: i32) -> (i32, i32) {
    %c0_i32 = arith.constant 0 : i32
    %c0_i32_0 = arith.constant 0 : i32
    return %arg0, %c0_i32 : i32, i32
  }
}

module attributes {stable_mosaic.version = 11 : i64} {
  func.func @_layer2_resident_kernel(%arg0: i32, %arg1: memref<128x256xbf16, #tpu.memory_space<vmem>>, %arg2: memref<256x128xbf16, #tpu.memory_space<vmem>>, %arg3: memref<1x128xf32, #tpu.memory_space<vmem>>, %arg4: memref<128x128xf32, #tpu.memory_space<vmem>>) attributes {dimension_semantics = [#tpu.dimension_semantics<parallel>], iteration_bounds = array<i64: 2>, scalar_prefetch = 0 : i64, scratch_operands = 0 : i64, tpu.core_type = #tpu.core_type<tc>, window_params = [{transform_indices = @transform_0, window_bounds = array<i64: 128, 256>}, {pipeline_mode = #tpu.pipeline_mode<synchronous>, transform_indices = @transform_1, window_bounds = array<i64: 256, 128>}, {pipeline_mode = #tpu.pipeline_mode<synchronous>, transform_indices = @transform_2, window_bounds = array<i64: 1, 128>}, {transform_indices = @transform_3, window_bounds = array<i64: 128, 128>}]} {
    %c0 = arith.constant 0 : index
    %c0_0 = arith.constant 0 : index
    %0 = vector.load %arg1[%c0, %c0_0] : memref<128x256xbf16, #tpu.memory_space<vmem>>, vector<128x256xbf16>
    %c0_1 = arith.constant 0 : index
    %c0_2 = arith.constant 0 : index
    %1 = vector.load %arg2[%c0_1, %c0_2] : memref<256x128xbf16, #tpu.memory_space<vmem>>, vector<256x128xbf16>
    %cst = arith.constant dense<0.000000e+00> : vector<128x128xf32>
    %2 = tpu.matmul %0, %1, %cst {dimension_numbers = #tpu.dot_dimension_numbers<[1], [0], [0], [1], [0, 0, 1, 1], [], []>} : vector<128x256xbf16>, vector<256x128xbf16>, vector<128x128xf32> -> vector<128x128xf32>
    %c0_3 = arith.constant 0 : index
    %c0_4 = arith.constant 0 : index
    %3 = vector.load %arg3[%c0_3, %c0_4] : memref<1x128xf32, #tpu.memory_space<vmem>>, vector<1x128xf32>
    %4 = vector.broadcast %3 : vector<1x128xf32> to vector<128x128xf32>
    %5 = arith.addf %2, %4 : vector<128x128xf32>
    %6 = tpu.iota {dimensions = array<i32: 1>} : vector<128x128xi32>
    %c16_i32 = arith.constant 16 : i32
    %7 = vector.broadcast %c16_i32 : i32 to vector<128x128xi32>
    %8 = arith.cmpi slt, %6, %7 : vector<128x128xi32>
    %cst_5 = arith.constant -1.000000e+30 : f32
    %9 = vector.broadcast %cst_5 : f32 to vector<128x128xf32>
    %10 = arith.select %8, %5, %9 : vector<128x128xi1>, vector<128x128xf32>
    %cst_6 = arith.constant dense<0xFF800000> : vector<128xf32>
    %11 = vector.multi_reduction <maximumf>, %10, %cst_6 [1] : vector<128x128xf32> to vector<128xf32>
    %12 = vector.shape_cast %11 : vector<128xf32> to vector<128x1xf32>
    %13 = vector.broadcast %12 : vector<128x1xf32> to vector<128x128xf32>
    %14 = arith.subf %10, %13 : vector<128x128xf32>
    %15 = math.exp %14 : vector<128x128xf32>
    %cst_7 = arith.constant dense<0.000000e+00> : vector<128xf32>
    %16 = vector.multi_reduction <add>, %15, %cst_7 [1] : vector<128x128xf32> to vector<128xf32>
    %17 = vector.shape_cast %16 : vector<128xf32> to vector<128x1xf32>
    %18 = math.log %17 : vector<128x1xf32>
    %19 = vector.broadcast %18 : vector<128x1xf32> to vector<128x128xf32>
    %20 = arith.subf %14, %19 : vector<128x128xf32>
    %c0_8 = arith.constant 0 : index
    %c0_9 = arith.constant 0 : index
    %21 = vector.load %arg4[%c0_8, %c0_9] : memref<128x128xf32, #tpu.memory_space<vmem>>, vector<128x128xf32>
    tpu.vector_store %arg4[%c0_8, %c0_9], %20 {strides = array<i32>} : memref<128x128xf32, #tpu.memory_space<vmem>>, vector<128x128xf32>,
    return
  }
  func.func @transform_0(%arg0: i32) -> (i32, i32) {
    %c0_i32 = arith.constant 0 : i32
    %c0_i32_0 = arith.constant 0 : i32
    return %arg0, %c0_i32 : i32, i32
  }
  func.func @transform_1(%arg0: i32) -> (i32, i32) {
    %c0_i32 = arith.constant 0 : i32
    %c0_i32_0 = arith.constant 0 : i32
    %c0_i32_1 = arith.constant 0 : i32
    return %c0_i32, %c0_i32_0 : i32, i32
  }
  func.func @transform_2(%arg0: i32) -> (i32, i32) {
    %c0_i32 = arith.constant 0 : i32
    %c0_i32_0 = arith.constant 0 : i32
    %c0_i32_1 = arith.constant 0 : i32
    return %c0_i32, %c0_i32_0 : i32, i32
  }
  func.func @transform_3(%arg0: i32) -> (i32, i32) {
    %c0_i32 = arith.constant 0 : i32
    %c0_i32_0 = arith.constant 0 : i32
    return %arg0, %c0_i32 : i32, i32
  }
}

</mosaic_0001>

<bundles_post_ra>
// kernel: gcn_forward.3
= control target key start
LH: loop header
LB: loop body
LE: loop exit
PB: predicated region body
PF: predicated region fallthrough
CT: control target
= control target key end

     0   :  { %s726_s9 = smov 0   ;;  %s784_s0 = inlined_call_operand.vmem [shape: bf16[256,128], index: 0, kind: input, shape index: {}]   ;;  %s785_s1 = inlined_call_operand.vmem [shape: bf16[128,128], index: 1, kind: input, shape index: {}]   ;;  %s786_s2 = inlined_call_operand.vmem [shape: bf16[256,128], index: 2, kind: output, shape index: {}]  }
   0x1 LB: > { %s509_s10 = sadd.s32 4294967295, %s709_s9   ;;  %p513_p0 = scmp.ge.s32.totalorder %s709_s9, 1  ;;  %s709_s9 = sphi %s726_s9, %s12_s9  }
   0x2   : > { %p113_p1 = scmp.lt.s32.totalorder %s709_s9, 3 }
   0x4   : > { %p114_p2 = pnand %p513_p0, %p113_p1 }
   0x5   : > { %v687_v0 = vld [vmem:[%s785_s1] sm:$0xff] (!%p114_p2)   ;;  %s514_s13 = sshll.u32 (!%p114_p2), %s509_s10, 4  ;;  %v688_v1 = vld [vmem:[%s785_s1 + $0x8] sm:$0xff] (!%p114_p2)   ;;  %v689_v2 = vld [vmem:[%s785_s1 + $0x10] sm:$0xff] (!%p114_p2)  }
   0x6   : > { %117 = sbr.rel (%p114_p2) target bundleno = 264 (0x108), region = 28  ;;  %p136_p3 = scmp.lt.s32.totalorder (!%p114_p2), %s514_s13, 31  ;;  %631 = vmatprep.subr.bf16.mxu0 (!%p114_p2), %v687_v0  ;;  %663 = vmatprep.subr.bf16.mxu1 (!%p114_p2), %v687_v0  ;;  %v690_v3 = vld [vmem:[%s785_s1 + $0x18] sm:$0xff] (!%p114_p2)   ;;  %v691_v6 = vld [vmem:[%s785_s1 + $0x20] sm:$0xff] (!%p114_p2)   ;;  %v692_v7 = vld [vmem:[%s785_s1 + $0x28] sm:$0xff] (!%p114_p2)  }
   0x7   : > { %632 = vmatpush3.bf16.msra.mxu0 (!%p114_p2), %v687_v0  ;;  %671 = vmatpush3.bf16.msra.mxu1 (!%p114_p2), %v687_v0  ;;  %v693_v8 = vld [vmem:[%s785_s1 + $0x30] sm:$0xff] (!%p114_p2)   ;;  %v694_v9 = vld [vmem:[%s785_s1 + $0x38] sm:$0xff] (!%p114_p2)  }
   0x8   : > { %633 = vmatprep.subr.bf16.mxu0 (!%p114_p2), %v688_v1  ;;  %664 = vmatprep.subr.bf16.mxu1 (!%p114_p2), %v688_v1 }
   0xb   : > { %634 = vmatpush3.bf16.msra.mxu0 (!%p114_p2), %v688_v1  ;;  %672 = vmatpush3.bf16.msra.mxu1 (!%p114_p2), %v688_v1 }
   0xc   : > { %635 = vmatprep.subr.bf16.mxu0 (!%p114_p2), %v689_v2  ;;  %665 = vmatprep.subr.bf16.mxu1 (!%p114_p2), %v689_v2 }
   0xd   : > { %s788_s13 = smov (!%p136_p3, %s514_s13), 31 }
   0xe   : > { %s515_s18 = sshll.u32 %s788_s13, 2 }
   0xf   : > { %s751_s21 = scalar_lea.vmem %s784_s0, %s515_s18  ;;  %636 = vmatpush3.bf16.msra.mxu0 %v689_v2  ;;  %673 = vmatpush3.bf16.msra.mxu1 %v689_v2  ;;  %s145_s6 = scalar_lea.vmem %s786_s2, %s515_s18 }
  0x10   : > { %v695_v4 = vld [vmem:[%s751_s21] sm:$0xff]   ;;  %637 = vmatprep.subr.bf16.mxu0 %v690_v3  ;;  %666 = vmatprep.subr.bf16.mxu1 %v690_v3  ;;  %v697_v10 = vld [vmem:[%s751_s21 + $0x8] sm:$0xff]   ;;  %v699_v12 = vld [vmem:[%s751_s21 + $0x10] sm:$0xff]  }
  0x11   : > { %v696_v5 = vld [vmem:[%s751_s21 + $0x20] sm:$0xff]   ;;  %647 = vmatprep.mubr.bf16.mxu0 %v695_v4  ;;  %v698_v11 = vld [vmem:[%s751_s21 + $0x28] sm:$0xff]   ;;  %v700_v13 = vld [vmem:[%s751_s21 + $0x30] sm:$0xff]  }
  0x12   : > { %655 = vmatprep.mubr.bf16.mxu1 %v696_v5  ;;  %v701_v14 = vld [vmem:[%s751_s21 + $0x18] sm:$0xff]  }
  0x13   : > { %638 = vmatpush3.bf16.msra.mxu0 %v690_v3  ;;  %674 = vmatpush3.bf16.msra.mxu1 %v690_v3  ;;  %v702_v15 = vld [vmem:[%s751_s21 + $0x38] sm:$0xff]  }
  0x14   : > { %639 = vmatprep.subr.bf16.mxu0 %v691_v6  ;;  %667 = vmatprep.subr.bf16.mxu1 %v691_v6 }
  0x17   : > { %640 = vmatpush3.bf16.msra.mxu0 %v691_v6  ;;  %675 = vmatpush3.bf16.msra.mxu1 %v691_v6 }
  0x18   : > { %641 = vmatprep.subr.bf16.mxu0 %v692_v7  ;;  %668 = vmatprep.subr.bf16.mxu1 %v692_v7 }
  0x1b   : > { %642 = vmatpush3.bf16.msra.mxu0 %v692_v7  ;;  %676 = vmatpush3.bf16.msra.mxu1 %v692_v7 }
  0x1c   : > { %643 = vmatprep.subr.bf16.mxu0 %v693_v8  ;;  %669 = vmatprep.subr.bf16.mxu1 %v693_v8 }
  0x1f   : > { %644 = vmatpush3.bf16.msra.mxu0 %v693_v8  ;;  %677 = vmatpush3.bf16.msra.mxu1 %v693_v8 }
  0x20   : > { %645 = vmatprep.subr.bf16.mxu0 %v694_v9  ;;  %670 = vmatprep.subr.bf16.mxu1 %v694_v9 }
  0x23   : > { %646 = vmatpush3.bf16.msra.mxu0 %v694_v9  ;;  %678 = vmatpush3.bf16.msra.mxu1 %v694_v9 }
  0x26   : > { %648 = vmatmul.mubr.bf16.vlgmr.msra.gmra.mrb[0].mxu0 %v697_v10  ;;  %656 = vmatmul.mubr.bf16.vlgmr.msra.gmra.mrb[0].mxu1 %v698_v11 }
  0x27   : > { %651 = vmatprep.mubr.bf16.mxu0 %v699_v12  ;;  %659 = vmatprep.mubr.bf16.mxu1 %v700_v13 }
  0x2e   : > { %652 = vmatmul.mubr.bf16.gmra.mrb[4].mxu0 %v701_v14  ;;  %660 = vmatmul.mubr.bf16.gmra.mrb[4].mxu1 %v702_v15 }
  0xf9   : > { %v649_v16 = vpop.f32.mrb[0].mxu0  ;;  %v657_v17 = vpop.f32.mrb[0].mxu1 }
  0xfa   : > { %v310_v18 = vpop.f32.mrb[1].mxu0  ;;  %v342_v19 = vpop.f32.mrb[1].mxu1 }
  0xfb   : > { %v650_v20 = vpop.f32.mrb[2].mxu0  ;;  %v658_v21 = vpop.f32.mrb[2].mxu1 }
  0xfc   : > { %v576_v22 = vpack.c.bf16 %v650_v20, %v649_v16  ;;  %v596_v23 = vpack.c.bf16 %v658_v21, %v657_v17  ;;  %v313_v24 = vpop.f32.mrb[3].mxu0  ;;  %v345_v25 = vpop.f32.mrb[3].mxu1 }
  0xfd   : > { %v571_v26 = vpack.c.bf16 %v313_v24, %v310_v18  ;;  %v591_v27 = vpack.c.bf16 %v345_v25, %v342_v19 }
  0xfe   : > { %608 = vst [vmem:[%s145_s6 + $0x8] sm:$0xff] %v576_v22   ;;  %612 = vst [vmem:[%s145_s6 + $0x28] sm:$0xff] %v596_v23  }
  0xff   : > { %572 = vst [vmem:[%s145_s6] sm:$0xff] %v571_v26   ;;  %611 = vst [vmem:[%s145_s6 + $0x20] sm:$0xff] %v591_v27  }
 0x101   : > { %v653_v28 = vpop.f32.mrb[4].mxu0  ;;  %v661_v29 = vpop.f32.mrb[4].mxu1 }
 0x102   : > { %v326_v30 = vpop.f32.mrb[5].mxu0  ;;  %v358_v31 = vpop.f32.mrb[5].mxu1 }
 0x103   : > { %v654_v32 = vpop.f32.mrb[6].mxu0  ;;  %v662_v33 = vpop.f32.mrb[6].mxu1 }
 0x104   : > { %v586_v34 = vpack.c.bf16 %v654_v32, %v653_v28  ;;  %v606_v35 = vpack.c.bf16 %v662_v33, %v661_v29  ;;  %v329_v36 = vpop.f32.mrb[7].mxu0  ;;  %v361_v37 = vpop.f32.mrb[7].mxu1 }
 0x105   : > { %v581_v38 = vpack.c.bf16 %v329_v36, %v326_v30  ;;  %v601_v39 = vpack.c.bf16 %v361_v37, %v358_v31 }
 0x106   : > { %610 = vst [vmem:[%s145_s6 + $0x18] sm:$0xff] %v586_v34   ;;  %614 = vst [vmem:[%s145_s6 + $0x38] sm:$0xff] %v606_v35  }
 0x107   : > { %609 = vst [vmem:[%s145_s6 + $0x10] sm:$0xff] %v581_v38   ;;  %613 = vst [vmem:[%s145_s6 + $0x30] sm:$0xff] %v601_v39  }
 0x108 PF: > { %s12_s9 = sadd.s32 1, %s709_s9  }
 0x109   : > { %p9_p4 = scmp.ge.s32.totalorder %s12_s9, 4  }
 0x10b   :  { %11 = sbr.rel (!%p9_p4) target bundleno = 1 (0x1), region = 58 }

// kernel: gcn_forward.5
= control target key start
LH: loop header
LB: loop body
LE: loop exit
PB: predicated region body
PF: predicated region fallthrough
CT: control target
= control target key end

     0   :  { %s1023_s12 = smov 0   ;;  %s1315_s0 = inlined_call_operand.vmem [shape: bf16[256,256], index: 0, kind: input, shape index: {}]   ;;  %s1316_s1 = inlined_call_operand.vmem [shape: bf16[256,128], index: 1, kind: input, shape index: {}]   ;;  %s1317_s2 = inlined_call_operand.vmem [shape: f32[1,128], index: 2, kind: input, shape index: {}]   ;;  %s1318_s3 = inlined_call_operand.vmem [shape: f32[256,128], index: 3, kind: output, shape index: {}]  }
   0x1 LB: > { %s757_s13 = sadd.s32 4294967295, %s1001_s12   ;;  %p761_p0 = scmp.ge.s32.totalorder %s1001_s12, 1  ;;  %s1001_s12 = sphi %s1023_s12, %s13_s12  }
   0x2   : > { %p139_p1 = scmp.lt.s32.totalorder %s1001_s12, 3 }
   0x4   : > { %p140_p2 = pnand %p761_p0, %p139_p1 }
   0x5   : > { %v891_v0 = vld [vmem:[%s1316_s1 + $0x40] sm:$0xff] (!%p140_p2)   ;;  %s762_s16 = sshll.u32 (!%p140_p2), %s757_s13, 4  ;;  %v893_v2 = vld [vmem:[%s1316_s1 + $0x48] sm:$0xff] (!%p140_p2)   ;;  %v895_v4 = vld [vmem:[%s1316_s1 + $0x50] sm:$0xff] (!%p140_p2)   ;;  %v506_v32 = vlaneseq (!%p140_p2) }
   0x6   : > { %143 = sbr.rel (%p140_p2) target bundleno = 608 (0x260), region = 32  ;;  %v892_v1 = vld [vmem:[%s1316_s1] sm:$0xff] (!%p140_p2)   ;;  %803 = vmatprep.subr.bf16.mxu0 (!%p140_p2), %v891_v0  ;;  %867 = vmatprep.subr.bf16.mxu1 (!%p140_p2), %v891_v0  ;;  %v894_v3 = vld [vmem:[%s1316_s1 + $0x8] sm:$0xff] (!%p140_p2)   ;;  %p165_p3 = scmp.lt.s32.totalorder (!%p140_p2), %s762_s16, 31  ;;  %v896_v5 = vld [vmem:[%s1316_s1 + $0x10] sm:$0xff] (!%p140_p2)  }
   0x7   : > { %804 = vmatpush3.bf16.msra.mxu0 (!%p140_p2), %v892_v1  ;;  %875 = vmatpush3.bf16.msra.mxu1 (!%p140_p2), %v892_v1  ;;  %v897_v6 = vld [vmem:[%s1316_s1 + $0x58] sm:$0xff] (!%p140_p2)   ;;  %v899_v8 = vld [vmem:[%s1316_s1 + $0x60] sm:$0xff] (!%p140_p2)   ;;  %v901_v10 = vld [vmem:[%s1316_s1 + $0x68] sm:$0xff] (!%p140_p2)   ;;  %v1105_v33 = vand.u32 (!%p140_p2), 127, %v506_v32 }
   0x8   : > { %805 = vmatprep.subr.bf16.mxu0 (!%p140_p2), %v893_v2  ;;  %868 = vmatprep.subr.bf16.mxu1 (!%p140_p2), %v893_v2  ;;  %v898_v7 = vld [vmem:[%s1316_s1 + $0x18] sm:$0xff] (!%p140_p2)   ;;  %v900_v9 = vld [vmem:[%s1316_s1 + $0x20] sm:$0xff] (!%p140_p2)   ;;  %v902_v13 = vld [vmem:[%s1316_s1 + $0x28] sm:$0xff] (!%p140_p2)  }
   0x9   : > { %v903_v14 = vld [vmem:[%s1316_s1 + $0x70] sm:$0xff] (!%p140_p2)   ;;  %v905_v16 = vld [vmem:[%s1316_s1 + $0x78] sm:$0xff] (!%p140_p2)   ;;  %v1110_v38 = vld [vmem:[%s1317_s2] ss:$0 sm:$0xff] (!%p140_p2)  ;;  %vm508_vm0 = vcmp.lt.s32.totalorder (!%p140_p2), %v1105_v33, 16 }
   0xa   : > { %v904_v15 = vld [vmem:[%s1316_s1 + $0x30] sm:$0xff] (!%p140_p2)   ;;  %v906_v17 = vld [vmem:[%s1316_s1 + $0x38] sm:$0xff] (!%p140_p2)  }
   0xb   : > { %806 = vmatpush3.bf16.msra.mxu0 (!%p140_p2), %v894_v3  ;;  %876 = vmatpush3.bf16.msra.mxu1 (!%p140_p2), %v894_v3 }
   0xc   : > { %807 = vmatprep.subr.bf16.mxu0 (!%p140_p2), %v895_v4  ;;  %869 = vmatprep.subr.bf16.mxu1 (!%p140_p2), %v895_v4 }
   0xd   : > { %s1320_s16 = smov (!%p165_p3, %s762_s16), 31 }
   0xe   : > { %s802_s4 = sshll.u32 %s1320_s16, 3 }
   0xf   : > { %808 = vmatpush3.bf16.msra.mxu0 %v896_v5  ;;  %877 = vmatpush3.bf16.msra.mxu1 %v896_v5  ;;  %s1066_s9 = scalar_lea.vmem %s1315_s0, %s802_s4  ;;  %s1278_s30 = scalar_lea.vmem %s1318_s3, %s802_s4 }
  0x10   : > { %809 = vmatprep.subr.bf16.mxu0 %v897_v6  ;;  %870 = vmatprep.subr.bf16.mxu1 %v897_v6  ;;  %v909_v11 = vld [vmem:[%s1066_s9 + $0x4] ss:$8 sps:$4 sm:$0xff]   ;;  %v907_v18 = vld [vmem:[%s1066_s9] ss:$8 sps:$4 sm:$0xff]   ;;  %v913_v20 = vld [vmem:[%s1066_s9 + $0x14] ss:$8 sps:$4 sm:$0xff]  }
  0x11   : > { %v912_v12 = vld [vmem:[%s1066_s9 + $0x44] ss:$8 sps:$4 sm:$0xff]   ;;  %441 = vmatprep.mubr.bf16.mxu0 %v909_v11  ;;  %v910_v19 = vld [vmem:[%s1066_s9 + $0x40] ss:$8 sps:$4 sm:$0xff]   ;;  %v916_v21 = vld [vmem:[%s1066_s9 + $0x54] ss:$8 sps:$4 sm:$0xff]  }
  0x12   : > { %473 = vmatprep.mubr.bf16.mxu1 %v912_v12  ;;  %v915_v22 = vld [vmem:[%s1066_s9 + $0x10] ss:$8 sps:$4 sm:$0xff]   ;;  %v919_v24 = vld [vmem:[%s1066_s9 + $0x24] ss:$8 sps:$4 sm:$0xff]   ;;  %v921_v26 = vld [vmem:[%s1066_s9 + $0x20] ss:$8 sps:$4 sm:$0xff]  }
  0x13   : > { %810 = vmatpush3.bf16.msra.mxu0 %v898_v7  ;;  %878 = vmatpush3.bf16.msra.mxu1 %v898_v7  ;;  %v918_v23 = vld [vmem:[%s1066_s9 + $0x50] ss:$8 sps:$4 sm:$0xff]   ;;  %v922_v25 = vld [vmem:[%s1066_s9 + $0x64] ss:$8 sps:$4 sm:$0xff]   ;;  %v924_v27 = vld [vmem:[%s1066_s9 + $0x60] ss:$8 sps:$4 sm:$0xff]  }
  0x14   : > { %811 = vmatprep.subr.bf16.mxu0 %v899_v8  ;;  %871 = vmatprep.subr.bf16.mxu1 %v899_v8  ;;  %v925_v28 = vld [vmem:[%s1066_s9 + $0x34] ss:$8 sps:$4 sm:$0xff]   ;;  %v927_v30 = vld [vmem:[%s1066_s9 + $0x30] ss:$8 sps:$4 sm:$0xff]  }
  0x15   : > { %v928_v29 = vld [vmem:[%s1066_s9 + $0x74] ss:$8 sps:$4 sm:$0xff]   ;;  %v930_v31 = vld [vmem:[%s1066_s9 + $0x70] ss:$8 sps:$4 sm:$0xff]  }
  0x17   : > { %812 = vmatpush3.bf16.msra.mxu0 %v900_v9  ;;  %879 = vmatpush3.bf16.msra.mxu1 %v900_v9 }
  0x18   : > { %813 = vmatprep.subr.bf16.mxu0 %v901_v10  ;;  %872 = vmatprep.subr.bf16.mxu1 %v901_v10 }
  0x1b   : > { %814 = vmatpush3.bf16.msra.mxu0 %v902_v13  ;;  %880 = vmatpush3.bf16.msra.mxu1 %v902_v13 }
  0x1c   : > { %815 = vmatprep.subr.bf16.mxu0 %v903_v14  ;;  %873 = vmatprep.subr.bf16.mxu1 %v903_v14 }
  0x1f   : > { %816 = vmatpush3.bf16.msra.mxu0 %v904_v15  ;;  %881 = vmatpush3.bf16.msra.mxu1 %v904_v15 }
  0x20   : > { %817 = vmatprep.subr.bf16.mxu0 %v905_v16  ;;  %874 = vmatprep.subr.bf16.mxu1 %v905_v16 }
  0x23   : > { %818 = vmatpush3.bf16.msra.mxu0 %v906_v17  ;;  %882 = vmatpush3.bf16.msra.mxu1 %v906_v17 }
  0x26   : > { %442 = vmatmul.mubr.bf16.vlgmr.msra.gmra.mrb[0].mxu0 %v907_v18  ;;  %474 = vmatmul.mubr.bf16.vlgmr.msra.gmra.mrb[0].mxu1 %v910_v19 }
  0x27   : > { %449 = vmatprep.mubr.bf16.mxu0 %v913_v20  ;;  %481 = vmatprep.mubr.bf16.mxu1 %v916_v21 }
  0x2e   : > { %450 = vmatmul.mubr.bf16.gmra.mrb[4].mxu0 %v915_v22  ;;  %482 = vmatmul.mubr.bf16.gmra.mrb[4].mxu1 %v918_v23 }
  0x2f   : > { %457 = vmatprep.mubr.bf16.mxu0 %v919_v24  ;;  %489 = vmatprep.mubr.bf16.mxu1 %v922_v25 }
  0x36   : > { %458 = vmatmul.mubr.bf16.gmra.mrb[8].mxu0 %v921_v26  ;;  %490 = vmatmul.mubr.bf16.gmra.mrb[8].mxu1 %v924_v27 }
  0x37   : > { %465 = vmatprep.mubr.bf16.mxu0 %v925_v28  ;;  %497 = vmatprep.mubr.bf16.mxu1 %v928_v29 }
  0x3e   : > { %466 = vmatmul.mubr.bf16.gmra.mrb[12].mxu0 %v927_v30  ;;  %498 = vmatmul.mubr.bf16.gmra.mrb[12].mxu1 %v930_v31 }
  0xf9   : > { %v819_v34 = vpop.f32.mrb[0].mxu0  ;;  %v843_v35 = vpop.f32.mrb[0].mxu1 }
  0xfa   : > { %v820_v36 = vpop.f32.mrb[1].mxu0  ;;  %v844_v37 = vpop.f32.mrb[1].mxu1 }
  0xfb   : > { %v821_v39 = vadd.f32 %v820_v36, %v819_v34  ;;  %v845_v40 = vadd.f32 %v844_v37, %v843_v35  ;;  %v822_v41 = vpop.f32.mrb[2].mxu0  ;;  %v846_v42 = vpop.f32.mrb[2].mxu1 }
  0xfc   : > { %v823_v43 = vpop.f32.mrb[3].mxu0  ;;  %v847_v44 = vpop.f32.mrb[3].mxu1 }
  0xfd   : > { %v824_v45 = vadd.f32 %v823_v43, %v822_v41  ;;  %v848_v46 = vadd.f32 %v847_v44, %v846_v42  ;;  %v444_v47 = vadd.f32 %v821_v39, %v1110_v38  ;;  %v476_v48 = vadd.f32 %v845_v40, %v1110_v38 }
  0xff   : > { %v1117_v49 = vsel %vm508_vm0, %v444_v47, -1e+30  ;;  %v479_v50 = vadd.f32 %v848_v46, %v1110_v38  ;;  %v1127_v53 = vsel %vm508_vm0, %v476_v48, -1e+30  ;;  %v447_v60 = vadd.f32 %v824_v45, %v1110_v38 }
 0x100   : > { %525 = vmax.xlane.f32.xlu0 %v1117_v49 }
 0x101   : > { %v825_v51 = vpop.f32.mrb[4].mxu0  ;;  %v1123_v52 = vsel %vm508_vm0, %v479_v50, -1e+30  ;;  %v849_v54 = vpop.f32.mrb[4].mxu1  ;;  %v1140_v5 = vsel %vm508_vm0, %v447_v60, -1e+30 }
 0x102   : > { %543 = vmax.xlane.f32.xlu1 %v1123_v52  ;;  %v826_v55 = vpop.f32.mrb[5].mxu0  ;;  %v850_v56 = vpop.f32.mrb[5].mxu1 }
 0x103   : > { %v827_v57 = vadd.f32 %v826_v55, %v825_v51  ;;  %v828_v58 = vpop.f32.mrb[6].mxu0  ;;  %v851_v59 = vadd.f32 %v850_v56, %v849_v54  ;;  %v852_v61 = vpop.f32.mrb[6].mxu1 }
 0x104   : > { %541 = vmax.xlane.f32.xlu0 %v1127_v53  ;;  %v829_v62 = vpop.f32.mrb[7].mxu0  ;;  %v853_v63 = vpop.f32.mrb[7].mxu1 }
 0x105   : > { %v830_v0 = vadd.f32 %v829_v62, %v828_v58  ;;  %v452_v1 = vadd.f32 %v827_v57, %v1110_v38  ;;  %v854_v2 = vadd.f32 %v853_v63, %v852_v61  ;;  %v484_v3 = vadd.f32 %v851_v59, %v1110_v38 }
 0x107   : > { %v1136_v4 = vsel %vm508_vm0, %v452_v1, -1e+30  ;;  %v455_v6 = vadd.f32 %v830_v0, %v1110_v38  ;;  %v487_v7 = vadd.f32 %v854_v2, %v1110_v38  ;;  %v1152_v10 = vsel %vm508_vm0, %v484_v3, -1e+30 }
 0x108   : > { %529 = vmax.xlane.f32.xlu1 %v1136_v4  ;;  %527 = vmax.xlane.f32.xlu0 %v1140_v5 }
 0x109   : > { %v831_v8 = vpop.f32.mrb[8].mxu0  ;;  %v1148_v9 = vsel %vm508_vm0, %v455_v6, -1e+30  ;;  %v855_v11 = vpop.f32.mrb[8].mxu1  ;;  %v1158_v19 = vsel %vm508_vm0, %v487_v7, -1e+30 }
 0x10a   : > { %v832_v12 = vpop.f32.mrb[9].mxu0  ;;  %v856_v13 = vpop.f32.mrb[9].mxu1 }
 0x10b   : > { %v833_v14 = vadd.f32 %v832_v12, %v831_v8  ;;  %v834_v15 = vpop.f32.mrb[10].mxu0  ;;  %v857_v16 = vadd.f32 %v856_v13, %v855_v11  ;;  %v858_v17 = vpop.f32.mrb[10].mxu1 }
 0x10c   : > { %531 = vmax.xlane.f32.xlu1 %v1148_v9  ;;  %545 = vmax.xlane.f32.xlu0 %v1152_v10  ;;  %v835_v18 = vpop.f32.mrb[11].mxu0  ;;  %v859_v20 = vpop.f32.mrb[11].mxu1 }
 0x10d   : > { %v836_v21 = vadd.f32 %v835_v18, %v834_v15  ;;  %v460_v22 = vadd.f32 %v833_v14, %v1110_v38  ;;  %v860_v23 = vadd.f32 %v859_v20, %v858_v17  ;;  %v492_v24 = vadd.f32 %v857_v16, %v1110_v38 }
 0x10f   : > { %v1164_v25 = vsel %vm508_vm0, %v460_v22, -1e+30  ;;  %v463_v26 = vadd.f32 %v836_v21, %v1110_v38  ;;  %v495_v27 = vadd.f32 %v860_v23, %v1110_v38  ;;  %v1176_v30 = vsel %vm508_vm0, %v492_v24, -1e+30 }
 0x110   : > { %547 = vmax.xlane.f32.xlu1 %v1158_v19  ;;  %533 = vmax.xlane.f32.xlu0 %v1164_v25 }
 0x111   : > { %v837_v28 = vpop.f32.mrb[12].mxu0  ;;  %v1172_v29 = vsel %vm508_vm0, %v463_v26, -1e+30  ;;  %v861_v31 = vpop.f32.mrb[12].mxu1  ;;  %v1182_v41 = vsel %vm508_vm0, %v495_v27, -1e+30 }
 0x112   : > { %v838_v32 = vpop.f32.mrb[13].mxu0  ;;  %v862_v34 = vpop.f32.mrb[13].mxu1 }
 0x113   : > { %v839_v35 = vadd.f32 %v838_v32, %v837_v28  ;;  %v840_v36 = vpop.f32.mrb[14].mxu0  ;;  %v863_v37 = vadd.f32 %v862_v34, %v861_v31  ;;  %v864_v39 = vpop.f32.mrb[14].mxu1 }
 0x114   : > { %535 = vmax.xlane.f32.xlu1 %v1172_v29  ;;  %549 = vmax.xlane.f32.xlu0 %v1176_v30  ;;  %v841_v40 = vpop.f32.mrb[15].mxu0  ;;  %v865_v42 = vpop.f32.mrb[15].mxu1 }
 0x115   : > { %v842_v43 = vadd.f32 %v841_v40, %v840_v36  ;;  %v468_v44 = vadd.f32 %v839_v35, %v1110_v38  ;;  %v866_v45 = vadd.f32 %v865_v42, %v864_v39  ;;  %v500_v46 = vadd.f32 %v863_v37, %v1110_v38 }
 0x117   : > { %v1188_v47 = vsel %vm508_vm0, %v468_v44, -1e+30  ;;  %v471_v48 = vadd.f32 %v842_v43, %v1110_v38  ;;  %v1199_v51 = vsel %vm508_vm0, %v500_v46, -1e+30  ;;  %v503_v54 = vadd.f32 %v866_v45, %v1110_v38 }
 0x118   : > { %551 = vmax.xlane.f32.xlu1 %v1182_v41  ;;  %537 = vmax.xlane.f32.xlu0 %v1188_v47 }
 0x119   : > { %v1195_v50 = vsel %vm508_vm0, %v471_v48, -1e+30  ;;  %v1206_v55 = vsel %vm508_vm0, %v503_v54, -1e+30 }
 0x11c   : > { %539 = vmax.xlane.f32.xlu1 %v1195_v50  ;;  %553 = vmax.xlane.f32.xlu0 %v1199_v51 }
 0x120   : > { %555 = vmax.xlane.f32.xlu1 %v1206_v55 }
 0x18d   : > { %v526_v56 = vpop.xlane.xlu0 %525 }
 0x18e   : > { %v1210_v57 = vsub.f32 %v1117_v49, %v526_v56 }
 0x18f   : > { %v544_v59 = vpop.xlane.xlu1 %543 }
 0x190   : > { %v573_v58 = vmul.f32 1.442695, %v1210_v57  ;;  %v1218_v63 = vsub.f32 %v1123_v52, %v544_v59 }
 0x191   : > { %v542_v60 = vpop.xlane.xlu0 %541 }
 0x192   : > { %931 = vpow2.f32 %v573_v58  ;;  %v1214_v38 = vsub.f32 %v1127_v53, %v542_v60  ;;  %v591_v6 = vmul.f32 1.442695, %v1218_v63 }
 0x194   : > { %v589_v61 = vmul.f32 1.442695, %v1214_v38 }
 0x195   : > { %v530_v62 = vpop.xlane.xlu1 %529  ;;  %v528_v33 = vpop.xlane.xlu0 %527 }
 0x196   : > { %933 = vpow2.f32 %v589_v61  ;;  %v1221_v0 = vsub.f32 %v1136_v4, %v530_v62  ;;  %v1224_v49 = vsub.f32 %v1140_v5, %v528_v33 }
 0x198   : > { %v577_v1 = vmul.f32 1.442695, %v1221_v0  ;;  %v575_v2 = vmul.f32 1.442695, %v1224_v49 }
 0x199   : > { %v532_v53 = vpop.xlane.xlu1 %531  ;;  %v546_v3 = vpop.xlane.xlu0 %545 }
 0x19a   : > { %935 = vpow2.f32 %v577_v1  ;;  %v1230_v7 = vsub.f32 %v1148_v9, %v532_v53  ;;  %v1233_v52 = vsub.f32 %v1152_v10, %v546_v3 }
 0x19b   : > { %937 = vpow2.f32 %v575_v2 }
 0x19c   : > { %v932_v4 = vpop.eup %931  ;;  %v593_v5 = vmul.f32 1.442695, %v1233_v52  ;;  %939 = vpow2.f32 %v591_v6  ;;  %v579_v12 = vmul.f32 1.442695, %v1230_v7 }
 0x19d   : > { %v548_v8 = vpop.xlane.xlu1 %547  ;;  %605 = vadd.xlane.f32.xlu0 %v932_v4  ;;  %v534_v11 = vpop.xlane.xlu0 %533 }
 0x19e   : > { %v1238_v13 = vsub.f32 %v1158_v19, %v548_v8  ;;  %v1241_v14 = vsub.f32 %v1164_v25, %v534_v11  ;;  %941 = vpow2.f32 %v593_v5 }
 0x19f   : > { %943 = vpow2.f32 %v579_v12 }
 0x1a0   : > { %v934_v9 = vpop.eup %933  ;;  %v581_v10 = vmul.f32 1.442695, %v1241_v14  ;;  %v595_v17 = vmul.f32 1.442695, %v1238_v13 }
 0x1a1   : > { %v536_v15 = vpop.xlane.xlu1 %535  ;;  %621 = vadd.xlane.f32.xlu0 %v934_v9  ;;  %v550_v16 = vpop.xlane.xlu0 %549 }
 0x1a2   : > { %v1246_v18 = vsub.f32 %v1172_v29, %v536_v15  ;;  %v1249_v20 = vsub.f32 %v1176_v30, %v550_v16  ;;  %945 = vpow2.f32 %v581_v10 }
 0x1a3   : > { %947 = vpow2.f32 %v595_v17 }
 0x1a4   : > { %v936_v19 = vpop.eup %935  ;;  %v597_v21 = vmul.f32 1.442695, %v1249_v20  ;;  %v583_v25 = vmul.f32 1.442695, %v1246_v18 }
 0x1a5   : > { %v938_v22 = vpop.eup %937  ;;  %v552_v23 = vpop.xlane.xlu1 %551  ;;  %609 = vadd.xlane.f32.xlu0 %v936_v19 }
 0x1a6   : > { %v538_v24 = vpop.xlane.xlu0 %537  ;;  %v1254_v26 = vsub.f32 %v1182_v41, %v552_v23  ;;  %607 = vadd.xlane.f32.xlu1 %v938_v22  ;;  %949 = vpow2.f32 %v597_v21  ;;  %v940_v28 = vpop.eup %939 }
 0x1a7   : > { %v1257_v27 = vsub.f32 %v1188_v47, %v538_v24  ;;  %951 = vpow2.f32 %v583_v25 }
 0x1a8   : > { %v942_v30 = vpop.eup %941  ;;  %v599_v34 = vmul.f32 1.442695, %v1254_v26 }
 0x1a9   : > { %v585_v29 = vmul.f32 1.442695, %v1257_v27  ;;  %v540_v31 = vpop.xlane.xlu1 %539  ;;  %625 = vadd.xlane.f32.xlu0 %v942_v30  ;;  %v944_v37 = vpop.eup %943 }
 0x1aa   : > { %v554_v32 = vpop.xlane.xlu0 %553  ;;  %623 = vadd.xlane.f32.xlu1 %v940_v28  ;;  %v1265_v36 = vsub.f32 %v1195_v50, %v540_v31 }
 0x1ab   : > { %v1262_v35 = vsub.f32 %v1199_v51, %v554_v32  ;;  %953 = vpow2.f32 %v585_v29 }
 0x1ac   : > { %v946_v40 = vpop.eup %945  ;;  %955 = vpow2.f32 %v599_v34  ;;  %v587_v42 = vmul.f32 1.442695, %v1265_v36 }
 0x1ad   : > { %v601_v39 = vmul.f32 1.442695, %v1262_v35  ;;  %v556_v41 = vpop.xlane.xlu1 %555  ;;  %613 = vadd.xlane.f32.xlu0 %v946_v40  ;;  %v948_v44 = vpop.eup %947 }
 0x1ae   : > { %611 = vadd.xlane.f32.xlu1 %v944_v37  ;;  %v1270_v43 = vsub.f32 %v1206_v55, %v556_v41 }
 0x1af   : > { %957 = vpow2.f32 %v601_v39 }
 0x1b0   : > { %v950_v45 = vpop.eup %949  ;;  %959 = vpow2.f32 %v587_v42  ;;  %v603_v46 = vmul.f32 1.442695, %v1270_v43 }
 0x1b1   : > { %629 = vadd.xlane.f32.xlu0 %v950_v45  ;;  %v952_v47 = vpop.eup %951 }
 0x1b2   : > { %627 = vadd.xlane.f32.xlu1 %v948_v44  ;;  %961 = vpow2.f32 %v603_v46 }
 0x1b5   : > { %v954_v48 = vpop.eup %953 }
 0x1b6   : > { %615 = vadd.xlane.f32.xlu1 %v952_v47  ;;  %617 = vadd.xlane.f32.xlu0 %v954_v48  ;;  %v956_v50 = vpop.eup %955 }
 0x1b9   : > { %v958_v51 = vpop.eup %957 }
 0x1ba   : > { %631 = vadd.xlane.f32.xlu1 %v956_v50  ;;  %633 = vadd.xlane.f32.xlu0 %v958_v51  ;;  %v960_v54 = vpop.eup %959 }
 0x1bc   : > { %v962_v55 = vpop.eup %961 }
 0x1be   : > { %619 = vadd.xlane.f32.xlu1 %v960_v54 }
 0x1c2   : > { %635 = vadd.xlane.f32.xlu1 %v962_v55 }
 0x22a   : > { %v606_v56 = vpop.xlane.xlu0 %605 }
 0x22b   : > { %963 = vlog2.f32 %v606_v56 }
 0x22e   : > { %v622_v58 = vpop.xlane.xlu0 %621 }
 0x22f   : > { %965 = vlog2.f32 %v622_v58 }
 0x232   : > { %v610_v59 = vpop.xlane.xlu0 %609 }
 0x233   : > { %v608_v60 = vpop.xlane.xlu1 %607  ;;  %967 = vlog2.f32 %v610_v59 }
 0x234   : > { %969 = vlog2.f32 %v608_v60 }
 0x235   : > { %v964_v61 = vpop.eup %963 }
 0x236   : > { %v638_v62 = vmul.f32 0.6931472, %v964_v61  ;;  %v626_v1 = vpop.xlane.xlu0 %625 }
 0x237   : > { %v624_v33 = vpop.xlane.xlu1 %623 }
 0x238   : > { %v669_v2 = vsub.f32 %v1210_v57, %v638_v62  ;;  %971 = vlog2.f32 %v624_v33 }
 0x239   : > { %v966_v53 = vpop.eup %965  ;;  %973 = vlog2.f32 %v626_v1 }
 0x23a   : > { %685 = vst [vmem:[%s1278_s30] sm:$0xff] %v669_v2  ;;  %v654_v3 = vmul.f32 0.6931472, %v966_v53  ;;  %v614_v4 = vpop.xlane.xlu0 %613 }
 0x23b   : > { %v612_v6 = vpop.xlane.xlu1 %611 }
 0x23c   : > { %v677_v5 = vsub.f32 %v1214_v38, %v654_v3  ;;  %975 = vlog2.f32 %v612_v6 }
 0x23d   : > { %v968_v8 = vpop.eup %967  ;;  %977 = vlog2.f32 %v614_v4 }
 0x23e   : > { %v970_v11 = vpop.eup %969  ;;  %693 = vst [vmem:[%s1278_s30 + $0x40] sm:$0xff] %v677_v5  ;;  %v642_v12 = vmul.f32 0.6931472, %v968_v8  ;;  %v630_v57 = vpop.xlane.xlu0 %629 }
 0x23f   : > { %v640_v9 = vmul.f32 0.6931472, %v970_v11  ;;  %v628_v10 = vpop.xlane.xlu1 %627 }
 0x240   : > { %v671_v15 = vsub.f32 %v1221_v0, %v642_v12  ;;  %979 = vlog2.f32 %v628_v10 }
 0x241   : > { %v670_v16 = vsub.f32 %v1224_v49, %v640_v9  ;;  %981 = vlog2.f32 %v630_v57 }
 0x242   : > { %v972_v17 = vpop.eup %971  ;;  %687 = vst [vmem:[%s1278_s30 + $0x10] sm:$0xff] %v671_v15 }
 0x243   : > { %v974_v38 = vpop.eup %973  ;;  %686 = vst [vmem:[%s1278_s30 + $0x8] sm:$0xff] %v670_v16  ;;  %v656_v19 = vmul.f32 0.6931472, %v972_v17  ;;  %v616_v21 = vpop.xlane.xlu1 %615 }
 0x244   : > { %v618_v22 = vpop.xlane.xlu0 %617  ;;  %v658_v23 = vmul.f32 0.6931472, %v974_v38  ;;  %983 = vlog2.f32 %v616_v21 }
 0x245   : > { %v678_v24 = vsub.f32 %v1218_v63, %v656_v19  ;;  %985 = vlog2.f32 %v618_v22 }
 0x246   : > { %v976_v0 = vpop.eup %975  ;;  %v679_v25 = vsub.f32 %v1233_v52, %v658_v23 }
 0x247   : > { %v978_v49 = vpop.eup %977  ;;  %694 = vst [vmem:[%s1278_s30 + $0x48] sm:$0xff] %v678_v24  ;;  %v644_v28 = vmul.f32 0.6931472, %v976_v0  ;;  %v632_v29 = vpop.xlane.xlu1 %631 }
 0x248   : > { %v634_v30 = vpop.xlane.xlu0 %633  ;;  %695 = vst [vmem:[%s1278_s30 + $0x50] sm:$0xff] %v679_v25  ;;  %v646_v31 = vmul.f32 0.6931472, %v978_v49  ;;  %987 = vlog2.f32 %v632_v29 }
 0x249   : > { %v672_v32 = vsub.f32 %v1230_v7, %v644_v28  ;;  %989 = vlog2.f32 %v634_v30 }
 0x24a   : > { %v980_v34 = vpop.eup %979  ;;  %v673_v63 = vsub.f32 %v1241_v14, %v646_v31 }
 0x24b   : > { %v982_v37 = vpop.eup %981  ;;  %688 = vst [vmem:[%s1278_s30 + $0x18] sm:$0xff] %v672_v32  ;;  %v660_v52 = vmul.f32 0.6931472, %v980_v34  ;;  %v620_v39 = vpop.xlane.xlu1 %619 }
 0x24c   : > { %689 = vst [vmem:[%s1278_s30 + $0x20] sm:$0xff] %v673_v63  ;;  %v662_v40 = vmul.f32 0.6931472, %v982_v37  ;;  %991 = vlog2.f32 %v620_v39 }
 0x24d   : > { %v680_v41 = vsub.f32 %v1238_v13, %v660_v52 }
 0x24e   : > { %v984_v42 = vpop.eup %983  ;;  %v681_v44 = vsub.f32 %v1249_v20, %v662_v40 }
 0x24f   : > { %v986_v7 = vpop.eup %985  ;;  %696 = vst [vmem:[%s1278_s30 + $0x58] sm:$0xff] %v680_v41  ;;  %v648_v45 = vmul.f32 0.6931472, %v984_v42  ;;  %v636_v46 = vpop.xlane.xlu1 %635 }
 0x250   : > { %697 = vst [vmem:[%s1278_s30 + $0x60] sm:$0xff] %v681_v44  ;;  %v650_v14 = vmul.f32 0.6931472, %v986_v7  ;;  %993 = vlog2.f32 %v636_v46 }
 0x251   : > { %v674_v47 = vsub.f32 %v1246_v18, %v648_v45 }
 0x252   : > { %v988_v48 = vpop.eup %987  ;;  %v675_v50 = vsub.f32 %v1257_v27, %v650_v14 }
 0x253   : > { %v990_v13 = vpop.eup %989  ;;  %690 = vst [vmem:[%s1278_s30 + $0x28] sm:$0xff] %v674_v47  ;;  %v664_v51 = vmul.f32 0.6931472, %v988_v48 }
 0x254   : > { %691 = vst [vmem:[%s1278_s30 + $0x30] sm:$0xff] %v675_v50  ;;  %v666_v20 = vmul.f32 0.6931472, %v990_v13 }
 0x255   : > { %v682_v54 = vsub.f32 %v1254_v26, %v664_v51 }
 0x256   : > { %v992_v55 = vpop.eup %991  ;;  %v683_v56 = vsub.f32 %v1262_v35, %v666_v20 }
 0x257   : > { %698 = vst [vmem:[%s1278_s30 + $0x68] sm:$0xff] %v682_v54  ;;  %v652_v58 = vmul.f32 0.6931472, %v992_v55 }
 0x258   : > { %699 = vst [vmem:[%s1278_s30 + $0x70] sm:$0xff] %v683_v56 }
 0x259   : > { %v676_v18 = vsub.f32 %v1265_v36, %v652_v58 }
 0x25a   : > { %v994_v59 = vpop.eup %993 }
 0x25b   : > { %692 = vst [vmem:[%s1278_s30 + $0x38] sm:$0xff] %v676_v18  ;;  %v668_v60 = vmul.f32 0.6931472, %v994_v59 }
 0x25d   : > { %v684_v27 = vsub.f32 %v1270_v43, %v668_v60 }
 0x25f   : > { %700 = vst [vmem:[%s1278_s30 + $0x78] sm:$0xff] %v684_v27 }
 0x260 PF: > { %s13_s12 = sadd.s32 1, %s1001_s12  }
 0x261   : > { %p10_p4 = scmp.ge.s32.totalorder %s13_s12, 4  }
 0x263   :  { %12 = sbr.rel (!%p10_p4) target bundleno = 1 (0x1), region = 62 }

// kernel: gcn_forward.4
= control target key start
LH: loop header
LB: loop body
LE: loop exit
PB: predicated region body
PF: predicated region fallthrough
CT: control target
= control target key end

     0   :  { %s1188_s15 = smov 0   ;;  %s1320_s0 = inlined_call_operand.vmem [shape: bf16[256,256], index: 0, kind: input, shape index: {}]   ;;  %s1321_s1 = inlined_call_operand.vmem [shape: bf16[256,128], index: 1, kind: input, shape index: {}]   ;;  %s1322_s2 = inlined_call_operand.vmem [shape: f32[1,128], index: 2, kind: input, shape index: {}]   ;;  %s1323_s3 = inlined_call_operand.vmem [shape: bf16[128,128], index: 3, kind: input, shape index: {}]   ;;  %s1324_s4 = inlined_call_operand.vmem [shape: bf16[256,128], index: 4, kind: output, shape index: {}]  }
   0x1 LB: > { %s854_s16 = sadd.s32 4294967295, %s1161_s15   ;;  %p858_p0 = scmp.ge.s32.totalorder %s1161_s15, 1  ;;  %s1161_s15 = sphi %s1188_s15, %s14_s15  }
   0x2   : > { %p164_p1 = scmp.lt.s32.totalorder %s1161_s15, 3 }
   0x4   : > { %p165_p2 = pnand %p858_p0, %p164_p1 }
   0x5   : > { %v1107_v0 = vld [vmem:[%s1321_s1 + $0x40] sm:$0xff] (!%p165_p2)   ;;  %s859_s19 = sshll.u32 (!%p165_p2), %s854_s16, 4  ;;  %v1109_v2 = vld [vmem:[%s1321_s1 + $0x48] sm:$0xff] (!%p165_p2)   ;;  %v1111_v4 = vld [vmem:[%s1321_s1 + $0x50] sm:$0xff] (!%p165_p2)  }
   0x6   : > { %168 = sbr.rel (%p165_p2) target bundleno = 535 (0x217), region = 36  ;;  %v1108_v1 = vld [vmem:[%s1321_s1] sm:$0xff] (!%p165_p2)   ;;  %987 = vmatprep.subr.bf16.mxu0 (!%p165_p2), %v1107_v0  ;;  %v1110_v3 = vld [vmem:[%s1321_s1 + $0x8] sm:$0xff] (!%p165_p2)   ;;  %p192_p3 = scmp.lt.s32.totalorder (!%p165_p2), %s859_s19, 31  ;;  %v1112_v5 = vld [vmem:[%s1321_s1 + $0x10] sm:$0xff] (!%p165_p2)  }
   0x7   : > { %988 = vmatpush3.bf16.msra.mxu0 (!%p165_p2), %v1108_v1  ;;  %v1113_v6 = vld [vmem:[%s1321_s1 + $0x58] sm:$0xff] (!%p165_p2)   ;;  %v1115_v8 = vld [vmem:[%s1321_s1 + $0x60] sm:$0xff] (!%p165_p2)   ;;  %v1117_v10 = vld [vmem:[%s1321_s1 + $0x68] sm:$0xff] (!%p165_p2)  }
   0x8   : > { %989 = vmatprep.subr.bf16.mxu0 (!%p165_p2), %v1109_v2  ;;  %v1114_v7 = vld [vmem:[%s1321_s1 + $0x18] sm:$0xff] (!%p165_p2)   ;;  %v1116_v9 = vld [vmem:[%s1321_s1 + $0x20] sm:$0xff] (!%p165_p2)   ;;  %v1118_v12 = vld [vmem:[%s1321_s1 + $0x28] sm:$0xff] (!%p165_p2)  }
   0x9   : > { %v1119_v13 = vld [vmem:[%s1321_s1 + $0x70] sm:$0xff] (!%p165_p2)   ;;  %v1121_v15 = vld [vmem:[%s1321_s1 + $0x78] sm:$0xff] (!%p165_p2)   ;;  %v1147_v17 = vld [vmem:[%s1323_s3] sm:$0xff] (!%p165_p2)  }
   0xa   : > { %v1120_v14 = vld [vmem:[%s1321_s1 + $0x30] sm:$0xff] (!%p165_p2)   ;;  %v1122_v16 = vld [vmem:[%s1321_s1 + $0x38] sm:$0xff] (!%p165_p2)   ;;  %v1148_v19 = vld [vmem:[%s1323_s3 + $0x8] sm:$0xff] (!%p165_p2)   ;;  %1067 = vmatprep.subr.bf16.mxu1 (!%p165_p2), %v1147_v17 }
   0xb   : > { %990 = vmatpush3.bf16.msra.mxu0 (!%p165_p2), %v1110_v3  ;;  %v1149_v21 = vld [vmem:[%s1323_s3 + $0x10] sm:$0xff] (!%p165_p2)   ;;  %1068 = vmatpush3.bf16.msra.mxu1 (!%p165_p2), %v1147_v17  ;;  %v1150_v35 = vld [vmem:[%s1323_s3 + $0x18] sm:$0xff] (!%p165_p2)   ;;  %v1151_v36 = vld [vmem:[%s1323_s3 + $0x20] sm:$0xff] (!%p165_p2)  }
   0xc   : > { %991 = vmatprep.subr.bf16.mxu0 (!%p165_p2), %v1111_v4  ;;  %1069 = vmatprep.subr.bf16.mxu1 (!%p165_p2), %v1148_v19  ;;  %v1152_v37 = vld [vmem:[%s1323_s3 + $0x28] sm:$0xff] (!%p165_p2)   ;;  %v1153_v38 = vld [vmem:[%s1323_s3 + $0x30] sm:$0xff] (!%p165_p2)   ;;  %v1154_v39 = vld [vmem:[%s1323_s3 + $0x38] sm:$0xff] (!%p165_p2)  }
   0xd   : > { %s1326_s19 = smov (!%p192_p3, %s859_s19), 31  ;;  %v1295_v42 = vld [vmem:[%s1322_s2] ss:$0 sm:$0xff] }
   0xe   : > { %s923_s8 = sshll.u32 %s1326_s19, 3  ;;  %s863_s24 = sshll.u32 %s1326_s19, 2 }
   0xf   : > { %992 = vmatpush3.bf16.msra.mxu0 %v1112_v5  ;;  %s1229_s13 = scalar_lea.vmem %s1320_s0, %s923_s8  ;;  %1070 = vmatpush3.bf16.msra.mxu1 %v1148_v19  ;;  %s202_s27 = scalar_lea.vmem %s1324_s4, %s863_s24 }
  0x10   : > { %993 = vmatprep.subr.bf16.mxu0 %v1113_v6  ;;  %v1125_v11 = vld [vmem:[%s1229_s13 + $0x4] ss:$8 sps:$4 sm:$0xff]   ;;  %v1123_v18 = vld [vmem:[%s1229_s13] ss:$8 sps:$4 sm:$0xff]   ;;  %v1126_v20 = vld [vmem:[%s1229_s13 + $0x14] ss:$8 sps:$4 sm:$0xff]   ;;  %1071 = vmatprep.subr.bf16.mxu1 %v1149_v21 }
  0x11   : > { %468 = vmatprep.mubr.bf16.mxu0 %v1125_v11  ;;  %v1128_v22 = vld [vmem:[%s1229_s13 + $0x10] ss:$8 sps:$4 sm:$0xff]   ;;  %v1129_v23 = vld [vmem:[%s1229_s13 + $0x24] ss:$8 sps:$4 sm:$0xff]   ;;  %v1131_v24 = vld [vmem:[%s1229_s13 + $0x20] ss:$8 sps:$4 sm:$0xff]  }
  0x12   : > { %v1132_v25 = vld [vmem:[%s1229_s13 + $0x34] ss:$8 sps:$4 sm:$0xff]   ;;  %v1134_v26 = vld [vmem:[%s1229_s13 + $0x30] ss:$8 sps:$4 sm:$0xff]   ;;  %v1135_v27 = vld [vmem:[%s1229_s13 + $0x44] ss:$8 sps:$4 sm:$0xff]  }
  0x13   : > { %994 = vmatpush3.bf16.msra.mxu0 %v1114_v7  ;;  %1072 = vmatpush3.bf16.msra.mxu1 %v1149_v21  ;;  %v1137_v28 = vld [vmem:[%s1229_s13 + $0x40] ss:$8 sps:$4 sm:$0xff]   ;;  %v1138_v29 = vld [vmem:[%s1229_s13 + $0x54] ss:$8 sps:$4 sm:$0xff]   ;;  %v1140_v30 = vld [vmem:[%s1229_s13 + $0x50] ss:$8 sps:$4 sm:$0xff]  }
  0x14   : > { %995 = vmatprep.subr.bf16.mxu0 %v1115_v8  ;;  %v1141_v31 = vld [vmem:[%s1229_s13 + $0x64] ss:$8 sps:$4 sm:$0xff]   ;;  %v1143_v32 = vld [vmem:[%s1229_s13 + $0x60] ss:$8 sps:$4 sm:$0xff]   ;;  %v1144_v33 = vld [vmem:[%s1229_s13 + $0x74] ss:$8 sps:$4 sm:$0xff]   ;;  %1073 = vmatprep.subr.bf16.mxu1 %v1150_v35 }
  0x15   : > { %v1146_v34 = vld [vmem:[%s1229_s13 + $0x70] ss:$8 sps:$4 sm:$0xff]  }
  0x17   : > { %996 = vmatpush3.bf16.msra.mxu0 %v1116_v9  ;;  %1074 = vmatpush3.bf16.msra.mxu1 %v1150_v35 }
  0x18   : > { %997 = vmatprep.subr.bf16.mxu0 %v1117_v10  ;;  %1075 = vmatprep.subr.bf16.mxu1 %v1151_v36 }
  0x1b   : > { %998 = vmatpush3.bf16.msra.mxu0 %v1118_v12  ;;  %1076 = vmatpush3.bf16.msra.mxu1 %v1151_v36 }
  0x1c   : > { %999 = vmatprep.subr.bf16.mxu0 %v1119_v13  ;;  %1077 = vmatprep.subr.bf16.mxu1 %v1152_v37 }
  0x1f   : > { %1000 = vmatpush3.bf16.msra.mxu0 %v1120_v14  ;;  %1078 = vmatpush3.bf16.msra.mxu1 %v1152_v37 }
  0x20   : > { %1001 = vmatprep.subr.bf16.mxu0 %v1121_v15  ;;  %1079 = vmatprep.subr.bf16.mxu1 %v1153_v38 }
  0x23   : > { %1002 = vmatpush3.bf16.msra.mxu0 %v1122_v16  ;;  %1080 = vmatpush3.bf16.msra.mxu1 %v1153_v38 }
  0x24   : > { %1081 = vmatprep.subr.bf16.mxu1 %v1154_v39 }
  0x26   : > { %469 = vmatmul.mubr.bf16.vlgmr.msra.gmra.mrb[0].mxu0 %v1123_v18 }
  0x27   : > { %476 = vmatprep.mubr.bf16.mxu0 %v1126_v20  ;;  %1082 = vmatpush3.bf16.msra.mxu1 %v1154_v39 }
  0x2e   : > { %477 = vmatmul.mubr.bf16.gmra.mrb[4].mxu0 %v1128_v22 }
  0x2f   : > { %484 = vmatprep.mubr.bf16.mxu0 %v1129_v23 }
  0x36   : > { %485 = vmatmul.mubr.bf16.gmra.mrb[8].mxu0 %v1131_v24 }
  0x37   : > { %492 = vmatprep.mubr.bf16.mxu0 %v1132_v25 }
  0x3e   : > { %493 = vmatmul.mubr.bf16.gmra.mrb[12].mxu0 %v1134_v26 }
  0x3f   : > { %500 = vmatprep.mubr.bf16.mxu0 %v1135_v27 }
  0x46   : > { %501 = vmatmul.mubr.bf16.gmra.mrb[16].mxu0 %v1137_v28 }
  0x47   : > { %508 = vmatprep.mubr.bf16.mxu0 %v1138_v29 }
  0x4e   : > { %509 = vmatmul.mubr.bf16.gmra.mrb[20].mxu0 %v1140_v30 }
  0x4f   : > { %516 = vmatprep.mubr.bf16.mxu0 %v1141_v31 }
  0x56   : > { %517 = vmatmul.mubr.bf16.gmra.mrb[24].mxu0 %v1143_v32 }
  0x57   : > { %524 = vmatprep.mubr.bf16.mxu0 %v1144_v33 }
  0x5e   : > { %525 = vmatmul.mubr.bf16.gmra.mrb[28].mxu0 %v1146_v34 }
  0xf9   : > { %v1003_v40 = vpop.f32.mrb[0].mxu0 }
  0xfa   : > { %v1004_v41 = vpop.f32.mrb[1].mxu0 }
  0xfb   : > { %v1005_v43 = vadd.f32 %v1004_v41, %v1003_v40  ;;  %v1006_v44 = vpop.f32.mrb[2].mxu0 }
  0xfc   : > { %v1007_v45 = vpop.f32.mrb[3].mxu0 }
  0xfd   : > { %v1008_v46 = vadd.f32 %v1007_v45, %v1006_v44  ;;  %v471_v47 = vadd.f32 %v1005_v43, %v1295_v42 }
  0xff   : > { %v474_v48 = vadd.f32 %v1008_v46, %v1295_v42  ;;  %v533_v50 = vmax.f32 %v471_v47, 0.0 }
 0x101   : > { %v1009_v49 = vpop.f32.mrb[4].mxu0  ;;  %v534_v51 = vmax.f32 %v474_v48, 0.0 }
 0x102   : > { %v1010_v52 = vpop.f32.mrb[5].mxu0 }
 0x103   : > { %v1011_v53 = vadd.f32 %v1010_v52, %v1009_v49  ;;  %v1012_v54 = vpop.f32.mrb[6].mxu0  ;;  %v549_v55 = vpack.c.bf16 %v534_v51, %v533_v50 }
 0x104   : > { %v1013_v56 = vpop.f32.mrb[7].mxu0 }
 0x105   : > { %v479_v57 = vadd.f32 %v1011_v53, %v1295_v42  ;;  %v1014_v58 = vadd.f32 %v1013_v56, %v1012_v54  ;;  %1083 = vmatprep.mubr.bf16.mxu1 %v549_v55 }
 0x107   : > { %v482_v59 = vadd.f32 %v1014_v58, %v1295_v42  ;;  %v535_v60 = vmax.f32 %v479_v57, 0.0 }
 0x109   : > { %v536_v61 = vmax.f32 %v482_v59, 0.0  ;;  %v1015_v62 = vpop.f32.mrb[8].mxu0 }
 0x10a   : > { %v1016_v63 = vpop.f32.mrb[9].mxu0 }
 0x10b   : > { %v1017_v0 = vadd.f32 %v1016_v63, %v1015_v62  ;;  %v1018_v1 = vpop.f32.mrb[10].mxu0  ;;  %v550_v2 = vpack.c.bf16 %v536_v61, %v535_v60 }
 0x10c   : > { %v1019_v3 = vpop.f32.mrb[11].mxu0 }
 0x10d   : > { %v487_v4 = vadd.f32 %v1017_v0, %v1295_v42  ;;  %v1020_v5 = vadd.f32 %v1019_v3, %v1018_v1  ;;  %1084 = vmatmul.mubr.bf16.vlgmr.msra.gmra.mrb[0].mxu1 %v550_v2 }
 0x10f   : > { %v490_v6 = vadd.f32 %v1020_v5, %v1295_v42  ;;  %v537_v7 = vmax.f32 %v487_v4, 0.0 }
 0x111   : > { %v538_v8 = vmax.f32 %v490_v6, 0.0  ;;  %v1021_v9 = vpop.f32.mrb[12].mxu0 }
 0x112   : > { %v1022_v10 = vpop.f32.mrb[13].mxu0 }
 0x113   : > { %v1023_v11 = vadd.f32 %v1022_v10, %v1021_v9  ;;  %v1024_v12 = vpop.f32.mrb[14].mxu0  ;;  %v551_v13 = vpack.c.bf16 %v538_v8, %v537_v7 }
 0x114   : > { %v1025_v14 = vpop.f32.mrb[15].mxu0 }
 0x115   : > { %v495_v15 = vadd.f32 %v1023_v11, %v1295_v42  ;;  %v1026_v16 = vadd.f32 %v1025_v14, %v1024_v12  ;;  %1087 = vmatprep.mubr.bf16.mxu1 %v551_v13 }
 0x117   : > { %v498_v17 = vadd.f32 %v1026_v16, %v1295_v42  ;;  %v539_v18 = vmax.f32 %v495_v15, 0.0 }
 0x119   : > { %v540_v19 = vmax.f32 %v498_v17, 0.0  ;;  %v1027_v20 = vpop.f32.mrb[16].mxu0 }
 0x11a   : > { %v1028_v21 = vpop.f32.mrb[17].mxu0 }
 0x11b   : > { %v1029_v22 = vadd.f32 %v1028_v21, %v1027_v20  ;;  %v1030_v23 = vpop.f32.mrb[18].mxu0  ;;  %v552_v24 = vpack.c.bf16 %v540_v19, %v539_v18 }
 0x11c   : > { %v1031_v25 = vpop.f32.mrb[19].mxu0 }
 0x11d   : > { %v503_v26 = vadd.f32 %v1029_v22, %v1295_v42  ;;  %v1032_v27 = vadd.f32 %v1031_v25, %v1030_v23  ;;  %1088 = vmatmul.mubr.bf16.gmra.mrb[4].mxu1 %v552_v24 }
 0x11f   : > { %v506_v28 = vadd.f32 %v1032_v27, %v1295_v42  ;;  %v541_v29 = vmax.f32 %v503_v26, 0.0 }
 0x121   : > { %v542_v30 = vmax.f32 %v506_v28, 0.0  ;;  %v1033_v31 = vpop.f32.mrb[20].mxu0 }
 0x122   : > { %v1034_v32 = vpop.f32.mrb[21].mxu0 }
 0x123   : > { %v1035_v33 = vadd.f32 %v1034_v32, %v1033_v31  ;;  %v1036_v34 = vpop.f32.mrb[22].mxu0  ;;  %v553_v35 = vpack.c.bf16 %v542_v30, %v541_v29 }
 0x124   : > { %v1037_v36 = vpop.f32.mrb[23].mxu0 }
 0x125   : > { %v511_v37 = vadd.f32 %v1035_v33, %v1295_v42  ;;  %v1038_v38 = vadd.f32 %v1037_v36, %v1036_v34  ;;  %1091 = vmatprep.mubr.bf16.mxu1 %v553_v35 }
 0x127   : > { %v514_v39 = vadd.f32 %v1038_v38, %v1295_v42  ;;  %v543_v40 = vmax.f32 %v511_v37, 0.0 }
 0x129   : > { %v544_v41 = vmax.f32 %v514_v39, 0.0  ;;  %v1039_v43 = vpop.f32.mrb[24].mxu0 }
 0x12a   : > { %v1040_v44 = vpop.f32.mrb[25].mxu0 }
 0x12b   : > { %v1041_v45 = vadd.f32 %v1040_v44, %v1039_v43  ;;  %v1042_v46 = vpop.f32.mrb[26].mxu0  ;;  %v554_v47 = vpack.c.bf16 %v544_v41, %v543_v40 }
 0x12c   : > { %v1043_v48 = vpop.f32.mrb[27].mxu0 }
 0x12d   : > { %v519_v49 = vadd.f32 %v1041_v45, %v1295_v42  ;;  %v1044_v50 = vadd.f32 %v1043_v48, %v1042_v46  ;;  %1092 = vmatmul.mubr.bf16.gmra.mrb[8].mxu1 %v554_v47 }
 0x12f   : > { %v522_v51 = vadd.f32 %v1044_v50, %v1295_v42  ;;  %v545_v52 = vmax.f32 %v519_v49, 0.0 }
 0x131   : > { %v546_v53 = vmax.f32 %v522_v51, 0.0  ;;  %v1045_v54 = vpop.f32.mrb[28].mxu0 }
 0x132   : > { %v1046_v55 = vpop.f32.mrb[29].mxu0 }
 0x133   : > { %v1047_v56 = vadd.f32 %v1046_v55, %v1045_v54  ;;  %v1048_v57 = vpop.f32.mrb[30].mxu0  ;;  %v555_v58 = vpack.c.bf16 %v546_v53, %v545_v52 }
 0x134   : > { %v1049_v59 = vpop.f32.mrb[31].mxu0 }
 0x135   : > { %v527_v60 = vadd.f32 %v1047_v56, %v1295_v42  ;;  %v1050_v61 = vadd.f32 %v1049_v59, %v1048_v57  ;;  %1095 = vmatprep.mubr.bf16.mxu1 %v555_v58 }
 0x137   : > { %v530_v62 = vadd.f32 %v1050_v61, %v1295_v42  ;;  %v547_v63 = vmax.f32 %v527_v60, 0.0 }
 0x139   : > { %v548_v0 = vmax.f32 %v530_v62, 0.0 }
 0x13b   : > { %v556_v1 = vpack.c.bf16 %v548_v0, %v547_v63 }
 0x13d   : > { %1096 = vmatmul.mubr.bf16.gmra.mrb[12].mxu1 %v556_v1 }
 0x1e0   : > { %v1085_v2 = vpop.f32.mrb[0].mxu1 }
 0x1e1   : > { %v655_v3 = vpop.f32.mrb[1].mxu1 }
 0x1e2   : > { %v1086_v4 = vpop.f32.mrb[2].mxu1 }
 0x1e3   : > { %v948_v5 = vpack.c.bf16 %v1086_v4, %v1085_v2  ;;  %v658_v6 = vpop.f32.mrb[3].mxu1 }
 0x1e4   : > { %v943_v7 = vpack.c.bf16 %v658_v6, %v655_v3 }
 0x1e5   : > { %980 = vst [vmem:[%s202_s27 + $0x8] sm:$0xff] %v948_v5  }
 0x1e6   : > { %944 = vst [vmem:[%s202_s27] sm:$0xff] %v943_v7  }
 0x1f0   : > { %v1089_v8 = vpop.f32.mrb[4].mxu1 }
 0x1f1   : > { %v671_v9 = vpop.f32.mrb[5].mxu1 }
 0x1f2   : > { %v1090_v42 = vpop.f32.mrb[6].mxu1 }
 0x1f3   : > { %v958_v10 = vpack.c.bf16 %v1090_v42, %v1089_v8  ;;  %v674_v11 = vpop.f32.mrb[7].mxu1 }
 0x1f4   : > { %v953_v12 = vpack.c.bf16 %v674_v11, %v671_v9 }
 0x1f5   : > { %982 = vst [vmem:[%s202_s27 + $0x18] sm:$0xff] %v958_v10  }
 0x1f6   : > { %981 = vst [vmem:[%s202_s27 + $0x10] sm:$0xff] %v953_v12  }
 0x200   : > { %v1093_v13 = vpop.f32.mrb[8].mxu1 }
 0x201   : > { %v687_v14 = vpop.f32.mrb[9].mxu1 }
 0x202   : > { %v1094_v15 = vpop.f32.mrb[10].mxu1 }
 0x203   : > { %v968_v16 = vpack.c.bf16 %v1094_v15, %v1093_v13  ;;  %v690_v17 = vpop.f32.mrb[11].mxu1 }
 0x204   : > { %v963_v18 = vpack.c.bf16 %v690_v17, %v687_v14 }
 0x205   : > { %984 = vst [vmem:[%s202_s27 + $0x28] sm:$0xff] %v968_v16  }
 0x206   : > { %983 = vst [vmem:[%s202_s27 + $0x20] sm:$0xff] %v963_v18  }
 0x210   : > { %v1097_v19 = vpop.f32.mrb[12].mxu1 }
 0x211   : > { %v703_v20 = vpop.f32.mrb[13].mxu1 }
 0x212   : > { %v1098_v21 = vpop.f32.mrb[14].mxu1 }
 0x213   : > { %v978_v22 = vpack.c.bf16 %v1098_v21, %v1097_v19  ;;  %v706_v23 = vpop.f32.mrb[15].mxu1 }
 0x214   : > { %v973_v24 = vpack.c.bf16 %v706_v23, %v703_v20 }
 0x215   : > { %986 = vst [vmem:[%s202_s27 + $0x38] sm:$0xff] %v978_v22  }
 0x216   : > { %985 = vst [vmem:[%s202_s27 + $0x30] sm:$0xff] %v973_v24  }
 0x217 PF: > { %s14_s15 = sadd.s32 1, %s1161_s15  }
 0x218   : > { %p11_p4 = scmp.ge.s32.totalorder %s14_s15, 4  }
 0x21a   :  { %13 = sbr.rel (!%p11_p4) target bundleno = 1 (0x1), region = 66 }

</bundles_post_ra>
